<compile_context>
chip_gen: v7x
topology: tpu7x:2x2x1
jax: 0.10.0
libtpu: 0.0.40
codegen_flags: <defaults>
</compile_context>

<pallas_src>
import functools

import jax
import jax.numpy as jnp
from jax.experimental import pallas as pl
from jax.experimental.pallas import tpu as pltpu


# ---------------------------------------------------------------------------
# Pass 1: pooled means -> gate -> gated weights (B,C,C) and gated bias (B,1,C).
# Grid: (B, num_spatial_tiles); the spatial-tile axis is a reduction ("arbitrary").
# ---------------------------------------------------------------------------
def _gate_kernel(x1_ref, x2_ref, wt_ref, bt_ref, ws_ref, bs_ref,
                 wl_top_ref, wl_bot_ref,
                 wtg_ref, wsg_ref, gb_ref,
                 acc1_ref, acc2_ref, *, inv_hw, C):
    t = pl.program_id(1)

    @pl.when(t == 0)
    def _():
        acc1_ref[...] = jnp.zeros_like(acc1_ref)
        acc2_ref[...] = jnp.zeros_like(acc2_ref)

    # Accumulate per-channel spatial sums of this tile in f32.
    acc1_ref[...] += jnp.sum(x1_ref[0].astype(jnp.float32), axis=0, keepdims=True)
    acc2_ref[...] += jnp.sum(x2_ref[0].astype(jnp.float32), axis=0, keepdims=True)

    @pl.when(t == pl.num_programs(1) - 1)
    def _():
        # Linearity: mean(conv1x1(x)) == mean(x) @ W + b  -> tiny (1,C) matmuls (f32).
        m1 = acc1_ref[...] * inv_hw                                    # (1, C)
        m2 = acc2_ref[...] * inv_hw
        p1 = jnp.dot(m1, wt_ref[...], preferred_element_type=jnp.float32) + bt_ref[...]
        p2 = jnp.dot(m2, ws_ref[...], preferred_element_type=jnp.float32) + bs_ref[...]

        # Linear(2C -> 2C, no bias) split into its two C-row halves + ReLU.
        y = (jnp.dot(p1, wl_top_ref[...], preferred_element_type=jnp.float32)
             + jnp.dot(p2, wl_bot_ref[...], preferred_element_type=jnp.float32))  # (1, 2C)
        y = jnp.maximum(y, 0.0)
        y1 = y[:, :C]
        y2 = y[:, C:]

        # 2-way softmax over the stacked branch dimension (per channel).
        m = jnp.maximum(y1, y2)
        e1 = jnp.exp(y1 - m)
        e2 = jnp.exp(y2 - m)
        inv = pl.reciprocal(e1 + e2, approx=True)
        s1 = e1 * inv
        s2 = e2 * inv

        # Fold the gate into the conv weights / biases once per batch.
        wtg_ref[0] = (wt_ref[...] * s1).astype(wtg_ref.dtype)          # (C, C) bf16
        wsg_ref[0] = (ws_ref[...] * s2).astype(wsg_ref.dtype)
        gb_ref[0] = bt_ref[...] * s1 + bs_ref[...] * s2                # gated bias


# ---------------------------------------------------------------------------
# Pass 2: pure matmuls with pre-gated weights.
#   out = x1 @ (Wt * s1) + x2 @ (Ws * s2) + (bt*s1 + bs*s2)
# Grid: (B, num_spatial_tiles), both axes independent ("parallel", "parallel").
# ---------------------------------------------------------------------------
def _apply_kernel(gb_ref, x1_ref, x2_ref, wtg_ref, wsg_ref, o_ref):
    acc = jnp.dot(x1_ref[0], wtg_ref[0], preferred_element_type=jnp.float32)
    acc = acc + jnp.dot(x2_ref[0], wsg_ref[0], preferred_element_type=jnp.float32)
    o_ref[0] = (acc + gb_ref[0]).astype(o_ref.dtype)


def _pick_spatial_tile(hw, max_tile=512):
    """Largest spatial tile <= max_tile that divides hw and is a multiple of 8,
    else the full extent (always a legal block)."""
    if hw <= max_tile:
        return hw
    for t in range(max_tile, 7, -1):
        if t % 8 == 0 and hw % t == 0:
            return t
    return hw


def aw3_pallas_channels_last(x1, x2, wt, bt, ws, bs, wl, *, max_tile=512):
    """x1, x2: (B, HW, C) activations (any float dtype; cast to bf16 for the MXU).
       wt, ws: (C_out, C_in) 1x1-conv weights; bt, bs: (C,) biases;
       wl: (2C, 2C) Linear weight (out, in), no bias.
       Returns (B, HW, C) float32."""
    B, HW, C = x1.shape
    thw = _pick_spatial_tile(HW, max_tile)
    nt = HW // thw
    inv_hw = 1.0 / float(HW)

    cdt = jnp.bfloat16
    x1b = x1.astype(cdt)
    x2b = x2.astype(cdt)
    # Pass-1 weights stay f32 (tiny traffic, better gate precision).
    wt_t = jnp.transpose(wt).astype(jnp.float32)      # (C_in, C_out)
    ws_t = jnp.transpose(ws).astype(jnp.float32)
    wl_t = jnp.transpose(wl).astype(jnp.float32)      # (in, out) = (2C, 2C)
    wl_top = wl_t[:C, :]                              # rows fed by pooled branch 1
    wl_bot = wl_t[C:, :]                              # rows fed by pooled branch 2
    bt_r = bt.reshape(1, C).astype(jnp.float32)
    bs_r = bs.reshape(1, C).astype(jnp.float32)

    xspec = pl.BlockSpec((1, thw, C), lambda b, t: (b, t, 0))
    wspec = pl.BlockSpec((C, C), lambda b, t: (0, 0))
    bspec = pl.BlockSpec((1, C), lambda b, t: (0, 0))
    lspec = pl.BlockSpec((C, 2 * C), lambda b, t: (0, 0))
    gspec = pl.BlockSpec((1, 1, C), lambda b, t: (b, 0, 0))
    wgspec = pl.BlockSpec((1, C, C), lambda b, t: (b, 0, 0))

    # ---- Pass 1: gate folded into per-batch weights + bias ---------------
    wtg, wsg, gb = pl.pallas_call(
        functools.partial(_gate_kernel, inv_hw=inv_hw, C=C),
        out_shape=(jax.ShapeDtypeStruct((B, C, C), cdt),
                   jax.ShapeDtypeStruct((B, C, C), cdt),
                   jax.ShapeDtypeStruct((B, 1, C), jnp.float32)),
        grid_spec=pltpu.PrefetchScalarGridSpec(
            num_scalar_prefetch=0,
            grid=(B, nt),
            in_specs=[xspec, xspec, wspec, bspec, wspec, bspec, lspec, lspec],
            out_specs=[wgspec, wgspec, gspec],
            scratch_shapes=[pltpu.VMEM((1, C), jnp.float32),
                            pltpu.VMEM((1, C), jnp.float32)],
        ),
        compiler_params=pltpu.CompilerParams(
            dimension_semantics=("parallel", "arbitrary")),
    )(x1b, x2b, wt_t, bt_r, ws_t, bs_r, wl_top, wl_bot)

    # ---- Pass 2: gated output, tiled over the spatial dim ----------------
    out = pl.pallas_call(
        _apply_kernel,
        out_shape=jax.ShapeDtypeStruct((B, HW, C), jnp.float32),
        grid_spec=pltpu.PrefetchScalarGridSpec(
            num_scalar_prefetch=0,
            grid=(B, nt),
            in_specs=[gspec, xspec, xspec, wgspec, wgspec],
            out_specs=pl.BlockSpec((1, thw, C), lambda b, t: (b, t, 0)),
        ),
        compiler_params=pltpu.CompilerParams(
            dimension_semantics=("parallel", "parallel")),
    )(gb, x1b, x2b, wtg, wsg)
    return out


@functools.partial(jax.jit, static_argnames=("max_tile",))
def aw3_pallas(x1_nchw, x2_nchw, wt, bt, ws, bs, wl, *, max_tile=512):
    """NCHW convenience wrapper matching the PyTorch module interface."""
    B, C, H, W = x1_nchw.shape
    # TODO(synk): for production, feed channels-last activations directly (and keep
    # the consumer channels-last) so these full-HBM layout transposes disappear.
    x1 = jnp.transpose(x1_nchw, (0, 2, 3, 1)).reshape(B, H * W, C)
    x2 = jnp.transpose(x2_nchw, (0, 2, 3, 1)).reshape(B, H * W, C)
    out = aw3_pallas_channels_last(x1, x2, wt, bt, ws, bs, wl, max_tile=max_tile)
    return jnp.transpose(out.reshape(B, H, W, C), (0, 3, 1, 2))


def aw3_reference(x1_nchw, x2_nchw, wt, bt, ws, bs, wl):
    """Pure-JAX f32 reference mirroring the PyTorch forward."""
    C = x1_nchw.shape[1]
    a1 = jnp.einsum('bihw,oi->bohw', x1_nchw, wt) + bt[None, :, None, None]
    a2 = jnp.einsum('bihw,oi->bohw', x2_nchw, ws) + bs[None, :, None, None]
    y = jnp.concatenate([a1.mean(axis=(2, 3)), a2.mean(axis=(2, 3))], axis=-1)  # (B, 2C)
    y = jnp.maximum(y @ wl.T, 0.0)
    y1, y2 = y[:, :C], y[:, C:]
    ys = jax.nn.softmax(jnp.stack([y1, y2], axis=0), axis=0)
    g1 = ys[0][:, :, None, None]
    g2 = ys[1][:, :, None, None]
    return a1 * g1 + a2 * g2


if __name__ == "__main__":
    B, C, H, W = 2, 128, 16, 16

    key = jax.random.PRNGKey(0)
    k1, k2, k3, k4, k5, k6, k7 = jax.random.split(key, 7)

    x1 = jax.random.normal(k1, (B, C, H, W), dtype=jnp.float32)
    x2 = jax.random.normal(k2, (B, C, H, W), dtype=jnp.float32)

    # Synthetic parameters (shapes from AW3.__init__ with channel=C).
    wt = jax.random.normal(k3, (C, C), dtype=jnp.float32) * (2.0 / C) ** 0.5  # conv_t 1x1
    bt = jax.random.normal(k4, (C,), dtype=jnp.float32) * 0.01                # conv_t bias
    ws = jax.random.normal(k5, (C, C), dtype=jnp.float32) * (2.0 / C) ** 0.5  # conv_s 1x1
    bs = jax.random.normal(k6, (C,), dtype=jnp.float32) * 0.01                # conv_s bias
    wl = jax.random.normal(k7, (2 * C, 2 * C), dtype=jnp.float32) * 0.001     # Linear, no bias

    # max_tile=128 -> HW=256 is processed as 2 spatial tiles (exercises tiling path).
    out = aw3_pallas(x1, x2, wt, bt, ws, bs, wl, max_tile=128)
    out = jax.block_until_ready(out)

    ref = aw3_reference(x1, x2, wt, bt, ws, bs, wl)
    assert out.shape == (B, C, H, W)
    # bf16 matmuls (f32 accumulation) + approx reciprocal -> loosened tolerance.
    err = float(jnp.max(jnp.abs(out - ref)) / (jnp.max(jnp.abs(ref)) + 1e-6))
    assert err < 5e-2, f"mismatch vs reference: rel-to-max err = {err:.4g}"

    print("KERNEL_OK")
</pallas_src>

<mosaic_0001>
module attributes {stable_mosaic.version = 11 : i64} {
  func.func @_apply_kernel(%arg0: i32, %arg1: i32, %arg2: memref<1x1x128xf32, #tpu.memory_space<vmem>>, %arg3: memref<1x128x128xbf16, #tpu.memory_space<vmem>>, %arg4: memref<1x128x128xbf16, #tpu.memory_space<vmem>>, %arg5: memref<1x128x128xbf16, #tpu.memory_space<vmem>>, %arg6: memref<1x128x128xbf16, #tpu.memory_space<vmem>>, %arg7: memref<1x128x128xf32, #tpu.memory_space<vmem>>) attributes {dimension_semantics = [#tpu.dimension_semantics<parallel>, #tpu.dimension_semantics<parallel>], iteration_bounds = array<i64: 2, 2>, scalar_prefetch = 0 : i64, scratch_operands = 0 : i64, tpu.core_type = #tpu.core_type<tc>, window_params = [{transform_indices = @transform_0, window_bounds = array<i64: 1, 1, 128>}, {transform_indices = @transform_1, window_bounds = array<i64: 1, 128, 128>}, {transform_indices = @transform_2, window_bounds = array<i64: 1, 128, 128>}, {transform_indices = @transform_3, window_bounds = array<i64: 1, 128, 128>}, {transform_indices = @transform_4, window_bounds = array<i64: 1, 128, 128>}, {transform_indices = @transform_5, window_bounds = array<i64: 1, 128, 128>}]} {
    %c0 = arith.constant 0 : index
    %c0_0 = arith.constant 0 : index
    %c0_1 = arith.constant 0 : index
    %0 = vector.load %arg3[%c0, %c0_0, %c0_1] : memref<1x128x128xbf16, #tpu.memory_space<vmem>>, vector<1x128x128xbf16>
    %1 = vector.shape_cast %0 : vector<1x128x128xbf16> to vector<128x128xbf16>
    %c0_2 = arith.constant 0 : index
    %c0_3 = arith.constant 0 : index
    %c0_4 = arith.constant 0 : index
    %2 = vector.load %arg5[%c0_2, %c0_3, %c0_4] : memref<1x128x128xbf16, #tpu.memory_space<vmem>>, vector<1x128x128xbf16>
    %3 = vector.shape_cast %2 : vector<1x128x128xbf16> to vector<128x128xbf16>
    %cst = arith.constant dense<0.000000e+00> : vector<128x128xf32>
    %4 = tpu.matmul %1, %3, %cst {dimension_numbers = #tpu.dot_dimension_numbers<[1], [0], [0], [1], [0, 0, 1, 1], [], []>} : vector<128x128xbf16>, vector<128x128xbf16>, vector<128x128xf32> -> vector<128x128xf32>
    %c0_5 = arith.constant 0 : index
    %c0_6 = arith.constant 0 : index
    %c0_7 = arith.constant 0 : index
    %5 = vector.load %arg4[%c0_5, %c0_6, %c0_7] : memref<1x128x128xbf16, #tpu.memory_space<vmem>>, vector<1x128x128xbf16>
    %6 = vector.shape_cast %5 : vector<1x128x128xbf16> to vector<128x128xbf16>
    %c0_8 = arith.constant 0 : index
    %c0_9 = arith.constant 0 : index
    %c0_10 = arith.constant 0 : index
    %7 = vector.load %arg6[%c0_8, %c0_9, %c0_10] : memref<1x128x128xbf16, #tpu.memory_space<vmem>>, vector<1x128x128xbf16>
    %8 = vector.shape_cast %7 : vector<1x128x128xbf16> to vector<128x128xbf16>
    %cst_11 = arith.constant dense<0.000000e+00> : vector<128x128xf32>
    %9 = tpu.matmul %6, %8, %cst_11 {dimension_numbers = #tpu.dot_dimension_numbers<[1], [0], [0], [1], [0, 0, 1, 1], [], []>} : vector<128x128xbf16>, vector<128x128xbf16>, vector<128x128xf32> -> vector<128x128xf32>
    %10 = arith.addf %4, %9 : vector<128x128xf32>
    %c0_12 = arith.constant 0 : index
    %c0_13 = arith.constant 0 : index
    %c0_14 = arith.constant 0 : index
    %11 = vector.load %arg2[%c0_12, %c0_13, %c0_14] : memref<1x1x128xf32, #tpu.memory_space<vmem>>, vector<1x1x128xf32>
    %12 = vector.shape_cast %11 : vector<1x1x128xf32> to vector<1x128xf32>
    %13 = vector.broadcast %12 : vector<1x128xf32> to vector<128x128xf32>
    %14 = arith.addf %10, %13 : vector<128x128xf32>
    %c0_15 = arith.constant 0 : index
    %c0_16 = arith.constant 0 : index
    %c0_17 = arith.constant 0 : index
    %15 = vector.load %arg7[%c0_15, %c0_16, %c0_17] : memref<1x128x128xf32, #tpu.memory_space<vmem>>, vector<1x128x128xf32>
    %16 = vector.shape_cast %15 : vector<1x128x128xf32> to vector<128x128xf32>
    %17 = vector.shape_cast %14 : vector<128x128xf32> to vector<1x128x128xf32>
    tpu.vector_store %arg7[%c0_15, %c0_16, %c0_17], %17 {strides = array<i32>} : memref<1x128x128xf32, #tpu.memory_space<vmem>>, vector<1x128x128xf32>,
    return
  }
  func.func @transform_0(%arg0: i32, %arg1: i32) -> (i32, i32, i32) {
    %c0_i32 = arith.constant 0 : i32
    %c0_i32_0 = arith.constant 0 : i32
    %c0_i32_1 = arith.constant 0 : i32
    return %arg0, %c0_i32, %c0_i32_0 : i32, i32, i32
  }
  func.func @transform_1(%arg0: i32, %arg1: i32) -> (i32, i32, i32) {
    %c0_i32 = arith.constant 0 : i32
    %c0_i32_0 = arith.constant 0 : i32
    return %arg0, %arg1, %c0_i32 : i32, i32, i32
  }
  func.func @transform_2(%arg0: i32, %arg1: i32) -> (i32, i32, i32) {
    %c0_i32 = arith.constant 0 : i32
    %c0_i32_0 = arith.constant 0 : i32
    return %arg0, %arg1, %c0_i32 : i32, i32, i32
  }
  func.func @transform_3(%arg0: i32, %arg1: i32) -> (i32, i32, i32) {
    %c0_i32 = arith.constant 0 : i32
    %c0_i32_0 = arith.constant 0 : i32
    %c0_i32_1 = arith.constant 0 : i32
    return %arg0, %c0_i32, %c0_i32_0 : i32, i32, i32
  }
  func.func @transform_4(%arg0: i32, %arg1: i32) -> (i32, i32, i32) {
    %c0_i32 = arith.constant 0 : i32
    %c0_i32_0 = arith.constant 0 : i32
    %c0_i32_1 = arith.constant 0 : i32
    return %arg0, %c0_i32, %c0_i32_0 : i32, i32, i32
  }
  func.func @transform_5(%arg0: i32, %arg1: i32) -> (i32, i32, i32) {
    %c0_i32 = arith.constant 0 : i32
    %c0_i32_0 = arith.constant 0 : i32
    return %arg0, %arg1, %c0_i32 : i32, i32, i32
  }
}

module attributes {stable_mosaic.version = 11 : i64} {
  func.func @_gate_kernel(%arg0: i32, %arg1: i32, %arg2: memref<1x128x128xbf16, #tpu.memory_space<vmem>>, %arg3: memref<1x128x128xbf16, #tpu.memory_space<vmem>>, %arg4: memref<128x128xf32, #tpu.memory_space<vmem>>, %arg5: memref<1x128xf32, #tpu.memory_space<vmem>>, %arg6: memref<128x128xf32, #tpu.memory_space<vmem>>, %arg7: memref<1x128xf32, #tpu.memory_space<vmem>>, %arg8: memref<128x256xf32, #tpu.memory_space<vmem>>, %arg9: memref<128x256xf32, #tpu.memory_space<vmem>>, %arg10: memref<1x128x128xbf16, #tpu.memory_space<vmem>>, %arg11: memref<1x128x128xbf16, #tpu.memory_space<vmem>>, %arg12: memref<1x1x128xf32, #tpu.memory_space<vmem>>, %arg13: memref<1x128xf32, #tpu.memory_space<vmem>>, %arg14: memref<1x128xf32, #tpu.memory_space<vmem>>) attributes {dimension_semantics = [#tpu.dimension_semantics<parallel>, #tpu.dimension_semantics<arbitrary>], iteration_bounds = array<i64: 2, 2>, scalar_prefetch = 0 : i64, scratch_operands = 2 : i64, tpu.core_type = #tpu.core_type<tc>, window_params = [{transform_indices = @transform_0, window_bounds = array<i64: 1, 128, 128>}, {transform_indices = @transform_1, window_bounds = array<i64: 1, 128, 128>}, {pipeline_mode = #tpu.pipeline_mode<synchronous>, transform_indices = @transform_2, window_bounds = array<i64: 128, 128>}, {pipeline_mode = #tpu.pipeline_mode<synchronous>, transform_indices = @transform_3, window_bounds = array<i64: 1, 128>}, {pipeline_mode = #tpu.pipeline_mode<synchronous>, transform_indices = @transform_4, window_bounds = array<i64: 128, 128>}, {pipeline_mode = #tpu.pipeline_mode<synchronous>, transform_indices = @transform_5, window_bounds = array<i64: 1, 128>}, {pipeline_mode = #tpu.pipeline_mode<synchronous>, transform_indices = @transform_6, window_bounds = array<i64: 128, 256>}, {pipeline_mode = #tpu.pipeline_mode<synchronous>, transform_indices = @transform_7, window_bounds = array<i64: 128, 256>}, {transform_indices = @transform_8, window_bounds = array<i64: 1, 128, 128>}, {transform_indices = @transform_9, window_bounds = array<i64: 1, 128, 128>}, {transform_indices = @transform_10, window_bounds = array<i64: 1, 1, 128>}]} {
    %c0_i32 = arith.constant 0 : i32
    %0 = arith.cmpi eq, %arg1, %c0_i32 : i32
    %1 = arith.extui %0 : i1 to i32
    %c0_i32_0 = arith.constant 0 : i32
    %2 = arith.cmpi ne, %1, %c0_i32_0 : i32
    scf.if %2 {
      %cst_16 = arith.constant 0.000000e+00 : f32
      %22 = vector.broadcast %cst_16 : f32 to vector<1x128xf32>
      %c0_17 = arith.constant 0 : index
      %c0_18 = arith.constant 0 : index
      %23 = vector.load %arg13[%c0_17, %c0_18] : memref<1x128xf32, #tpu.memory_space<vmem>>, vector<1x128xf32>
      tpu.vector_store %arg13[%c0_17, %c0_18], %22 {strides = array<i32>} : memref<1x128xf32, #tpu.memory_space<vmem>>, vector<1x128xf32>,
      %cst_19 = arith.constant 0.000000e+00 : f32
      %24 = vector.broadcast %cst_19 : f32 to vector<1x128xf32>
      %c0_20 = arith.constant 0 : index
      %c0_21 = arith.constant 0 : index
      %25 = vector.load %arg14[%c0_20, %c0_21] : memref<1x128xf32, #tpu.memory_space<vmem>>, vector<1x128xf32>
      tpu.vector_store %arg14[%c0_20, %c0_21], %24 {strides = array<i32>} : memref<1x128xf32, #tpu.memory_space<vmem>>, vector<1x128xf32>,
    } else {
    }
    %c0 = arith.constant 0 : index
    %c0_1 = arith.constant 0 : index
    %3 = vector.load %arg13[%c0, %c0_1] : memref<1x128xf32, #tpu.memory_space<vmem>>, vector<1x128xf32>
    %c0_2 = arith.constant 0 : index
    %c0_3 = arith.constant 0 : index
    %c0_4 = arith.constant 0 : index
    %4 = vector.load %arg2[%c0_2, %c0_3, %c0_4] : memref<1x128x128xbf16, #tpu.memory_space<vmem>>, vector<1x128x128xbf16>
    %5 = vector.shape_cast %4 : vector<1x128x128xbf16> to vector<128x128xbf16>
    %6 = arith.extf %5 : vector<128x128xbf16> to vector<128x128xf32>
    %cst = arith.constant dense<0.000000e+00> : vector<128xf32>
    %7 = vector.multi_reduction <add>, %6, %cst [0] : vector<128x128xf32> to vector<128xf32>
    %8 = vector.shape_cast %7 : vector<128xf32> to vector<1x128xf32>
    %9 = arith.addf %3, %8 : vector<1x128xf32>
    %c0_5 = arith.constant 0 : index
    %c0_6 = arith.constant 0 : index
    %10 = vector.load %arg13[%c0_5, %c0_6] : memref<1x128xf32, #tpu.memory_space<vmem>>, vector<1x128xf32>
    tpu.vector_store %arg13[%c0_5, %c0_6], %9 {strides = array<i32>} : memref<1x128xf32, #tpu.memory_space<vmem>>, vector<1x128xf32>,
    %c0_7 = arith.constant 0 : index
    %c0_8 = arith.constant 0 : index
    %11 = vector.load %arg14[%c0_7, %c0_8] : memref<1x128xf32, #tpu.memory_space<vmem>>, vector<1x128xf32>
    %c0_9 = arith.constant 0 : index
    %c0_10 = arith.constant 0 : index
    %c0_11 = arith.constant 0 : index
    %12 = vector.load %arg3[%c0_9, %c0_10, %c0_11] : memref<1x128x128xbf16, #tpu.memory_space<vmem>>, vector<1x128x128xbf16>
    %13 = vector.shape_cast %12 : vector<1x128x128xbf16> to vector<128x128xbf16>
    %14 = arith.extf %13 : vector<128x128xbf16> to vector<128x128xf32>
    %cst_12 = arith.constant dense<0.000000e+00> : vector<128xf32>
    %15 = vector.multi_reduction <add>, %14, %cst_12 [0] : vector<128x128xf32> to vector<128xf32>
    %16 = vector.shape_cast %15 : vector<128xf32> to vector<1x128xf32>
    %17 = arith.addf %11, %16 : vector<1x128xf32>
    %c0_13 = arith.constant 0 : index
    %c0_14 = arith.constant 0 : index
    %18 = vector.load %arg14[%c0_13, %c0_14] : memref<1x128xf32, #tpu.memory_space<vmem>>, vector<1x128xf32>
    tpu.vector_store %arg14[%c0_13, %c0_14], %17 {strides = array<i32>} : memref<1x128xf32, #tpu.memory_space<vmem>>, vector<1x128xf32>,
    %c1_i32 = arith.constant 1 : i32
    %19 = arith.cmpi eq, %arg1, %c1_i32 : i32
    %20 = arith.extui %19 : i1 to i32
    %c0_i32_15 = arith.constant 0 : i32
    %21 = arith.cmpi ne, %20, %c0_i32_15 : i32
    scf.if %21 {
      %c0_16 = arith.constant 0 : index
      %c0_17 = arith.constant 0 : index
      %22 = vector.load %arg13[%c0_16, %c0_17] : memref<1x128xf32, #tpu.memory_space<vmem>>, vector<1x128xf32>
      %cst_18 = arith.constant 3.906250e-03 : f32
      %23 = vector.broadcast %cst_18 : f32 to vector<1x128xf32>
      %24 = arith.mulf %22, %23 : vector<1x128xf32>
      %c0_19 = arith.constant 0 : index
      %c0_20 = arith.constant 0 : index
      %25 = vector.load %arg14[%c0_19, %c0_20] : memref<1x128xf32, #tpu.memory_space<vmem>>, vector<1x128xf32>
      %cst_21 = arith.constant 3.906250e-03 : f32
      %26 = vector.broadcast %cst_21 : f32 to vector<1x128xf32>
      %27 = arith.mulf %25, %26 : vector<1x128xf32>
      %c0_22 = arith.constant 0 : index
      %c0_23 = arith.constant 0 : index
      %28 = vector.load %arg4[%c0_22, %c0_23] : memref<128x128xf32, #tpu.memory_space<vmem>>, vector<128x128xf32>
      %cst_24 = arith.constant dense<0.000000e+00> : vector<1x128xf32>
      %29 = tpu.matmul %24, %28, %cst_24 {dimension_numbers = #tpu.dot_dimension_numbers<[1], [0], [0], [1], [0, 0, 1, 1], [], []>} : vector<1x128xf32>, vector<128x128xf32>, vector<1x128xf32> -> vector<1x128xf32>
      %c0_25 = arith.constant 0 : index
      %c0_26 = arith.constant 0 : index
      %30 = vector.load %arg5[%c0_25, %c0_26] : memref<1x128xf32, #tpu.memory_space<vmem>>, vector<1x128xf32>
      %31 = arith.addf %29, %30 : vector<1x128xf32>
      %c0_27 = arith.constant 0 : index
      %c0_28 = arith.constant 0 : index
      %32 = vector.load %arg6[%c0_27, %c0_28] : memref<128x128xf32, #tpu.memory_space<vmem>>, vector<128x128xf32>
      %cst_29 = arith.constant dense<0.000000e+00> : vector<1x128xf32>
      %33 = tpu.matmul %27, %32, %cst_29 {dimension_numbers = #tpu.dot_dimension_numbers<[1], [0], [0], [1], [0, 0, 1, 1], [], []>} : vector<1x128xf32>, vector<128x128xf32>, vector<1x128xf32> -> vector<1x128xf32>
      %c0_30 = arith.constant 0 : index
      %c0_31 = arith.constant 0 : index
      %34 = vector.load %arg7[%c0_30, %c0_31] : memref<1x128xf32, #tpu.memory_space<vmem>>, vector<1x128xf32>
      %35 = arith.addf %33, %34 : vector<1x128xf32>
      %c0_32 = arith.constant 0 : index
      %c0_33 = arith.constant 0 : index
      %36 = vector.load %arg8[%c0_32, %c0_33] : memref<128x256xf32, #tpu.memory_space<vmem>>, vector<128x256xf32>
      %cst_34 = arith.constant dense<0.000000e+00> : vector<1x256xf32>
      %37 = tpu.matmul %31, %36, %cst_34 {dimension_numbers = #tpu.dot_dimension_numbers<[1], [0], [0], [1], [0, 0, 1, 1], [], []>} : vector<1x128xf32>, vector<128x256xf32>, vector<1x256xf32> -> vector<1x256xf32>
      %c0_35 = arith.constant 0 : index
      %c0_36 = arith.constant 0 : index
      %38 = vector.load %arg9[%c0_35, %c0_36] : memref<128x256xf32, #tpu.memory_space<vmem>>, vector<128x256xf32>
      %cst_37 = arith.constant dense<0.000000e+00> : vector<1x256xf32>
      %39 = tpu.matmul %35, %38, %cst_37 {dimension_numbers = #tpu.dot_dimension_numbers<[1], [0], [0], [1], [0, 0, 1, 1], [], []>} : vector<1x128xf32>, vector<128x256xf32>, vector<1x256xf32> -> vector<1x256xf32>
      %40 = arith.addf %37, %39 : vector<1x256xf32>
      %cst_38 = arith.constant 0.000000e+00 : f32
      %41 = vector.broadcast %cst_38 : f32 to vector<1x256xf32>
      %42 = arith.maximumf %40, %41 : vector<1x256xf32>
      %43 = vector.extract_strided_slice %42 {offsets = [0, 0], sizes = [1, 128], strides = [1, 1]} : vector<1x256xf32> to vector<1x128xf32>
      %44 = vector.extract_strided_slice %42 {offsets = [0, 128], sizes = [1, 128], strides = [1, 1]} : vector<1x256xf32> to vector<1x128xf32>
      %45 = arith.maximumf %43, %44 : vector<1x128xf32>
      %46 = arith.subf %43, %45 : vector<1x128xf32>
      %47 = math.exp %46 : vector<1x128xf32>
      %48 = arith.subf %44, %45 : vector<1x128xf32>
      %49 = math.exp %48 : vector<1x128xf32>
      %50 = arith.addf %47, %49 : vector<1x128xf32>
      %51 = tpu.reciprocal %50 {approx = true} : vector<1x128xf32> -> vector<1x128xf32>
      %52 = arith.mulf %47, %51 : vector<1x128xf32>
      %53 = arith.mulf %49, %51 : vector<1x128xf32>
      %c0_39 = arith.constant 0 : index
      %c0_40 = arith.constant 0 : index
      %54 = vector.load %arg4[%c0_39, %c0_40] : memref<128x128xf32, #tpu.memory_space<vmem>>, vector<128x128xf32>
      %55 = vector.broadcast %52 : vector<1x128xf32> to vector<128x128xf32>
      %56 = arith.mulf %54, %55 : vector<128x128xf32>
      %57 = arith.truncf %56 : vector<128x128xf32> to vector<128x128xbf16>
      %c0_41 = arith.constant 0 : index
      %c0_42 = arith.constant 0 : index
      %c0_43 = arith.constant 0 : index
      %58 = vector.load %arg10[%c0_41, %c0_42, %c0_43] : memref<1x128x128xbf16, #tpu.memory_space<vmem>>, vector<1x128x128xbf16>
      %59 = vector.shape_cast %58 : vector<1x128x128xbf16> to vector<128x128xbf16>
      %60 = vector.shape_cast %57 : vector<128x128xbf16> to vector<1x128x128xbf16>
      tpu.vector_store %arg10[%c0_41, %c0_42, %c0_43], %60 {strides = array<i32>} : memref<1x128x128xbf16, #tpu.memory_space<vmem>>, vector<1x128x128xbf16>,
      %c0_44 = arith.constant 0 : index
      %c0_45 = arith.constant 0 : index
      %61 = vector.load %arg6[%c0_44, %c0_45] : memref<128x128xf32, #tpu.memory_space<vmem>>, vector<128x128xf32>
      %62 = vector.broadcast %53 : vector<1x128xf32> to vector<128x128xf32>
      %63 = arith.mulf %61, %62 : vector<128x128xf32>
      %64 = arith.truncf %63 : vector<128x128xf32> to vector<128x128xbf16>
      %c0_46 = arith.constant 0 : index
      %c0_47 = arith.constant 0 : index
      %c0_48 = arith.constant 0 : index
      %65 = vector.load %arg11[%c0_46, %c0_47, %c0_48] : memref<1x128x128xbf16, #tpu.memory_space<vmem>>, vector<1x128x128xbf16>
      %66 = vector.shape_cast %65 : vector<1x128x128xbf16> to vector<128x128xbf16>
      %67 = vector.shape_cast %64 : vector<128x128xbf16> to vector<1x128x128xbf16>
      tpu.vector_store %arg11[%c0_46, %c0_47, %c0_48], %67 {strides = array<i32>} : memref<1x128x128xbf16, #tpu.memory_space<vmem>>, vector<1x128x128xbf16>,
      %c0_49 = arith.constant 0 : index
      %c0_50 = arith.constant 0 : index
      %68 = vector.load %arg5[%c0_49, %c0_50] : memref<1x128xf32, #tpu.memory_space<vmem>>, vector<1x128xf32>
      %69 = arith.mulf %68, %52 : vector<1x128xf32>
      %c0_51 = arith.constant 0 : index
      %c0_52 = arith.constant 0 : index
      %70 = vector.load %arg7[%c0_51, %c0_52] : memref<1x128xf32, #tpu.memory_space<vmem>>, vector<1x128xf32>
      %71 = arith.mulf %70, %53 : vector<1x128xf32>
      %72 = arith.addf %69, %71 : vector<1x128xf32>
      %c0_53 = arith.constant 0 : index
      %c0_54 = arith.constant 0 : index
      %c0_55 = arith.constant 0 : index
      %73 = vector.load %arg12[%c0_53, %c0_54, %c0_55] : memref<1x1x128xf32, #tpu.memory_space<vmem>>, vector<1x1x128xf32>
      %74 = vector.shape_cast %73 : vector<1x1x128xf32> to vector<1x128xf32>
      %75 = vector.shape_cast %72 : vector<1x128xf32> to vector<1x1x128xf32>
      tpu.vector_store %arg12[%c0_53, %c0_54, %c0_55], %75 {strides = array<i32>} : memref<1x1x128xf32, #tpu.memory_space<vmem>>, vector<1x1x128xf32>,
    } else {
    }
    return
  }
  func.func @transform_0(%arg0: i32, %arg1: i32) -> (i32, i32, i32) {
    %c0_i32 = arith.constant 0 : i32
    %c0_i32_0 = arith.constant 0 : i32
    return %arg0, %arg1, %c0_i32 : i32, i32, i32
  }
  func.func @transform_1(%arg0: i32, %arg1: i32) -> (i32, i32, i32) {
    %c0_i32 = arith.constant 0 : i32
    %c0_i32_0 = arith.constant 0 : i32
    return %arg0, %arg1, %c0_i32 : i32, i32, i32
  }
  func.func @transform_2(%arg0: i32, %arg1: i32) -> (i32, i32) {
    %c0_i32 = arith.constant 0 : i32
    %c0_i32_0 = arith.constant 0 : i32
    %c0_i32_1 = arith.constant 0 : i32
    return %c0_i32, %c0_i32_0 : i32, i32
  }
  func.func @transform_3(%arg0: i32, %arg1: i32) -> (i32, i32) {
    %c0_i32 = arith.constant 0 : i32
    %c0_i32_0 = arith.constant 0 : i32
    %c0_i32_1 = arith.constant 0 : i32
    return %c0_i32, %c0_i32_0 : i32, i32
  }
  func.func @transform_4(%arg0: i32, %arg1: i32) -> (i32, i32) {
    %c0_i32 = arith.constant 0 : i32
    %c0_i32_0 = arith.constant 0 : i32
    %c0_i32_1 = arith.constant 0 : i32
    return %c0_i32, %c0_i32_0 : i32, i32
  }
  func.func @transform_5(%arg0: i32, %arg1: i32) -> (i32, i32) {
    %c0_i32 = arith.constant 0 : i32
    %c0_i32_0 = arith.constant 0 : i32
    %c0_i32_1 = arith.constant 0 : i32
    return %c0_i32, %c0_i32_0 : i32, i32
  }
  func.func @transform_6(%arg0: i32, %arg1: i32) -> (i32, i32) {
    %c0_i32 = arith.constant 0 : i32
    %c0_i32_0 = arith.constant 0 : i32
    %c0_i32_1 = arith.constant 0 : i32
    return %c0_i32, %c0_i32_0 : i32, i32
  }
  func.func @transform_7(%arg0: i32, %arg1: i32) -> (i32, i32) {
    %c0_i32 = arith.constant 0 : i32
    %c0_i32_0 = arith.constant 0 : i32
    %c0_i32_1 = arith.constant 0 : i32
    return %c0_i32, %c0_i32_0 : i32, i32
  }
  func.func @transform_8(%arg0: i32, %arg1: i32) -> (i32, i32, i32) {
    %c0_i32 = arith.constant 0 : i32
    %c0_i32_0 = arith.constant 0 : i32
    %c0_i32_1 = arith.constant 0 : i32
    return %arg0, %c0_i32, %c0_i32_0 : i32, i32, i32
  }
  func.func @transform_9(%arg0: i32, %arg1: i32) -> (i32, i32, i32) {
    %c0_i32 = arith.constant 0 : i32
    %c0_i32_0 = arith.constant 0 : i32
    %c0_i32_1 = arith.constant 0 : i32
    return %arg0, %c0_i32, %c0_i32_0 : i32, i32, i32
  }
  func.func @transform_10(%arg0: i32, %arg1: i32) -> (i32, i32, i32) {
    %c0_i32 = arith.constant 0 : i32
    %c0_i32_0 = arith.constant 0 : i32
    %c0_i32_1 = arith.constant 0 : i32
    return %arg0, %c0_i32, %c0_i32_0 : i32, i32, i32
  }
}

</mosaic_0001>

<bundles_post_ra>
// kernel: aw3_pallas.2
= control target key start
LH: loop header
LB: loop body
LE: loop exit
PB: predicated region body
PF: predicated region fallthrough
CT: control target
= control target key end

     0   :  { %s1958_s13 = smov 0   ;;  %s1960_s14 = smov 0   ;;  %s2526_s0 = inlined_call_operand.vmem [shape: bf16[2,256,128], index: 0, kind: input, shape index: {}]   ;;  %s2527_s1 = inlined_call_operand.vmem [shape: bf16[2,256,128], index: 1, kind: input, shape index: {}]   ;;  %s2528_s2 = inlined_call_operand.vmem [shape: f32[128,128], index: 2, kind: input, shape index: {}]   ;;  %s2529_s3 = inlined_call_operand.vmem [shape: f32[1,128], index: 3, kind: input, shape index: {}]   ;;  %s2530_s4 = inlined_call_operand.vmem [shape: f32[128,128], index: 4, kind: input, shape index: {}]   ;;  %s2531_s5 = inlined_call_operand.vmem [shape: f32[1,128], index: 5, kind: input, shape index: {}]   ;;  %s2532_s6 = inlined_call_operand.vmem [shape: f32[128,256], index: 6, kind: input, shape index: {}]   ;;  %s2533_s7 = inlined_call_operand.vmem [shape: f32[128,256], index: 7, kind: input, shape index: {}]   ;;  %s2534_s8 = inlined_call_operand.vmem [shape: bf16[2,128,128], index: 8, kind: output, shape index: {0}]   ;;  %s2535_s9 = inlined_call_operand.vmem [shape: bf16[2,128,128], index: 9, kind: output, shape index: {1}]   ;;  %s2536_s10 = inlined_call_operand.vmem [shape: f32[2,1,128], index: 10, kind: output, shape index: {2}]  }
   0x1   :  { %s1962_s15 = smov 0   ;;  %s1964_s16 = smov 0  }
   0x2   :  { %s1966_s17 = smov 0  }
   0x3 LB: > { %2538 = sst [smem:[#allocation4_spill]] %s1893_s16  ;;  %s30_s18 = sadd.s32 1, %s1889_s15  ;;  %s1897_s17 = sphi %s1966_s17, %s21_s17   ;;  %s1893_s16 = sphi %s1964_s16, %s2543_s16   ;;  %s1889_s15 = sphi %s1962_s15, %s2545_s15   ;;  %s1885_s14 = sphi %s1960_s14, %s2541_s14   ;;  %s1881_s13 = sphi %s1958_s13, %s2544_s13  }
   0x4   : > { %s33_s19 = sadd.s32 1, %s1893_s16  ;;  %p31_p0 = scmp.ge.s32.totalorder %s30_s18, 2 }
   0x5   : > { %p1338_p1 = scmp.ge.s32.totalorder %s1897_s17, 1  ;;  %p353_p2 = scmp.lt.s32.totalorder %s1897_s17, 5 }
   0x6   : > { %s2547_s18 = smov (%p31_p0, %s30_s18), 0  ;;  %s2549_s19 = smov (!%p31_p0, %s33_s19), %s1893_s16 }
   0x7   : > { %2539 = sst [smem:[#allocation5_spill]] %s2547_s18  ;;  %p354_p3 = pnand %p1338_p1, %p353_p2 }
   0x8   : > { %p35_p4 = scmp.ge.s32.totalorder %s2549_s19, 2  ;;  %s1339_s20 = sshll.u32 (!%p354_p3), %s1881_s13, 4 }
   0x9   : > { %357 = sbr.rel (%p354_p3) target bundleno = 631 (0x277), region = 52  ;;  %p413_p5 = scmp.lt.s32.totalorder (!%p354_p3), %s1885_s14, 1 }
   0xa   : > { %s2551_s19 = smov (%p35_p4, %s2549_s19), 0  ;;  %p415_p6 = scmp.lt.s32.totalorder (!%p354_p3), %s1339_s20, 31 }
   0xb   : > { %2540 = sst [smem:[#allocation6_spill]] %s2551_s19  ;;  %p1349_p7 = scmp.ne.s32.totalorder (!%p354_p3), %s1881_s13, 0 }
  0x10   : > { %s2553_s14 = smov (!%p413_p5, %s1885_s14), 1  ;;  %s2555_s20 = smov (!%p415_p6, %s1339_s20), 31 }
  0x11   : > { %s1340_s21 = sshll.u32 %s2553_s14, 5  ;;  %s1385_s22 = sshll.u32 %s2553_s14, 6  ;;  %v1899_v0 = vmov (!%p1349_p7), 0.0  }
  0x12   : > { %s418_s23 = sadd.s32 %s1340_s21, %s2555_s20  ;;  %s1998_s26 = scalar_lea.vmem %s2534_s8, %s1385_s22  ;;  %449 = vst [vmem:[#allocation2] sm:$0x1] (!%p1349_p7), %v1899_v0  ;;  %450 = vst [vmem:[#allocation3] sm:$0x1] (!%p1349_p7), %v1899_v0 }
  0x13   : > { %s1341_s27 = sshll.u32 %s418_s23, 2  ;;  %s2003_s30 = scalar_lea.vmem %s2535_s9, %s1385_s22 }
  0x14   : > { %s2008_s19 = scalar_lea.vmem %s2526_s0, %s1341_s27  ;;  %s2013_s20 = scalar_lea.vmem %s2527_s1, %s1341_s27 }
  0x15   : > { %s444_s25 = scalar_lea.vmem %s2536_s10, %s2553_s14  ;;  %448 = sbr.rel (%p1349_p7) target bundleno = 28 (0x1c), region = 56 }
  0x1c PF: > { %v1420_v1 = vld [vmem:[%s2008_s19] sm:$0xff]   ;;  %v1563_v2 = vld [vmem:[%s2008_s19 + $0x8] sm:$0xff]   ;;  %v1564_v7 = vld [vmem:[%s2008_s19 + $0x10] sm:$0xff]   ;;  %p1350_p8 = scmp.ne.s32.totalorder %s1881_s13, 1 }
  0x1d   : > { %v1421_v3 = vunpack.c.l.bf16 %v1420_v1  ;;  %v1422_v4 = vunpack.c.h.bf16 %v1420_v1  ;;  %v1425_v5 = vunpack.c.l.bf16 %v1563_v2  ;;  %v1452_v6 = vld [vmem:[%s2013_s20] sm:$0xff]   ;;  %v1570_v8 = vld [vmem:[%s2013_s20 + $0x8] sm:$0xff]   ;;  %v1426_v9 = vunpack.c.h.bf16 %v1563_v2  ;;  %v1565_v16 = vld [vmem:[%s2008_s19 + $0x18] sm:$0xff]  }
  0x1e   : > { %v1453_v11 = vunpack.c.l.bf16 %v1452_v6  ;;  %v1454_v12 = vunpack.c.h.bf16 %v1452_v6  ;;  %v1429_v13 = vunpack.c.l.bf16 %v1564_v7  ;;  %v1457_v15 = vunpack.c.l.bf16 %v1570_v8  ;;  %v1571_v17 = vld [vmem:[%s2013_s20 + $0x10] sm:$0xff]   ;;  %v1566_v26 = vld [vmem:[%s2008_s19 + $0x20] sm:$0xff]   ;;  %v1572_v27 = vld [vmem:[%s2013_s20 + $0x18] sm:$0xff]  }
  0x1f   : > { %v484_v10 = vadd.f32 %v1422_v4, %v1421_v3  ;;  %v1430_v18 = vunpack.c.h.bf16 %v1564_v7  ;;  %v1458_v20 = vunpack.c.h.bf16 %v1570_v8  ;;  %v1433_v22 = vunpack.c.l.bf16 %v1565_v16  ;;  %v1567_v36 = vld [vmem:[%s2008_s19 + $0x28] sm:$0xff]   ;;  %v1573_v37 = vld [vmem:[%s2013_s20 + $0x20] sm:$0xff]   ;;  %v1568_v46 = vld [vmem:[%s2008_s19 + $0x30] sm:$0xff]  }
  0x20   : > { %v540_v21 = vadd.f32 %v1454_v12, %v1453_v11  ;;  %v1461_v24 = vunpack.c.l.bf16 %v1571_v17  ;;  %v1434_v28 = vunpack.c.h.bf16 %v1565_v16  ;;  %v1462_v30 = vunpack.c.h.bf16 %v1571_v17  ;;  %v1574_v47 = vld [vmem:[%s2013_s20 + $0x28] sm:$0xff]   ;;  %v1569_v56 = vld [vmem:[%s2008_s19 + $0x38] sm:$0xff]   ;;  %v1575_v57 = vld [vmem:[%s2013_s20 + $0x30] sm:$0xff]  }
  0x21   : > { %v485_v14 = vadd.f32 %v1425_v5, %v484_v10  ;;  %v1437_v32 = vunpack.c.l.bf16 %v1566_v26  ;;  %v1465_v34 = vunpack.c.l.bf16 %v1572_v27  ;;  %v1438_v38 = vunpack.c.h.bf16 %v1566_v26  ;;  %v1576_v2 = vld [vmem:[%s2013_s20 + $0x38] sm:$0xff]  }
  0x22   : > { %v541_v25 = vadd.f32 %v1457_v15, %v540_v21  ;;  %v1466_v40 = vunpack.c.h.bf16 %v1572_v27  ;;  %v1441_v42 = vunpack.c.l.bf16 %v1567_v36  ;;  %v1469_v44 = vunpack.c.l.bf16 %v1573_v37 }
  0x23   : > { %v486_v19 = vadd.f32 %v1426_v9, %v485_v14  ;;  %v1442_v48 = vunpack.c.h.bf16 %v1567_v36  ;;  %v1470_v50 = vunpack.c.h.bf16 %v1573_v37  ;;  %v1445_v52 = vunpack.c.l.bf16 %v1568_v46  ;;  %v2058_v36 = vld [vmem:[%s2528_s2 + $0x18] sm:$0xff] (!%p1350_p8) }
  0x24   : > { %v542_v31 = vadd.f32 %v1458_v20, %v541_v25  ;;  %v1473_v54 = vunpack.c.l.bf16 %v1574_v47  ;;  %v1446_v58 = vunpack.c.h.bf16 %v1568_v46  ;;  %v1474_v60 = vunpack.c.h.bf16 %v1574_v47  ;;  %v2100_v46 = vld [vmem:[%s2528_s2 + $0x48] sm:$0xff] (!%p1350_p8) }
  0x25   : > { %v487_v23 = vadd.f32 %v1429_v13, %v486_v19  ;;  %v1449_v62 = vunpack.c.l.bf16 %v1569_v56  ;;  %v1477_v0 = vunpack.c.l.bf16 %v1575_v57  ;;  %v1450_v3 = vunpack.c.h.bf16 %v1569_v56 }
  0x26   : > { %v543_v35 = vadd.f32 %v1461_v24, %v542_v31  ;;  %v1478_v5 = vunpack.c.h.bf16 %v1575_v57  ;;  %v1481_v8 = vunpack.c.l.bf16 %v1576_v2  ;;  %v1482_v11 = vunpack.c.h.bf16 %v1576_v2  ;;  %v2040_v31 = vld [vmem:[%s2528_s2] sm:$0xff] (!%p1350_p8)  ;;  %v2180_v2 = vld [vmem:[%s2530_s4 + $0x28] sm:$0xff] (!%p1350_p8) }
  0x27   : > { %v488_v29 = vadd.f32 %v1430_v18, %v487_v23  ;;  %v451_v23 = vld [vmem:[#allocation2] sm:$0x1]  ;;  %vm1901_vm0 = vmmov (!%p1350_p8), 0   ;;  %v1902_v37 = vmov (!%p1350_p8), 0.0  }
  0x28   : > { %v544_v41 = vadd.f32 %v1462_v30, %v543_v35  ;;  %1657 = vmatprep.mubr.msk.f32.mxu1 (!%p1350_p8), %vm1901_vm0, %v1902_v37  ;;  %873 = vmatprep.mubr.f32.mxu0 (!%p1350_p8), %v1902_v37 }
  0x29   : > { %v489_v33 = vadd.f32 %v1433_v22, %v488_v29 }
  0x2a   : > { %v545_v45 = vadd.f32 %v1465_v34, %v544_v41  ;;  %v1900_v34 = vmov (!%p1350_p8), 0.0|0.0  }
  0x2b   : > { %v490_v39 = vadd.f32 %v1434_v28, %v489_v33  ;;  %v507_v28 = vld [vmem:[#allocation3] sm:$0x1]  ;;  %v2050_v33 = vld [vmem:[%s2528_s2 + $0x10] sm:$0xff] (!%p1350_p8)  ;;  %1695 = vmatprep.subr.bf16.mxu1 (!%p1350_p8), %v1900_v34 }
  0x2c   : > { %v546_v51 = vadd.f32 %v1466_v40, %v545_v45  ;;  %v2074_v40 = vld [vmem:[%s2528_s2 + $0x28] sm:$0xff] (!%p1350_p8)  ;;  %v2095_v45 = vld [vmem:[%s2528_s2 + $0x40] sm:$0xff] (!%p1350_p8) }
  0x2d   : > { %v491_v43 = vadd.f32 %v1437_v32, %v490_v39  ;;  %v2045_v32 = vld [vmem:[%s2528_s2 + $0x8] sm:$0xff] (!%p1350_p8)  ;;  %v2069_v39 = vld [vmem:[%s2528_s2 + $0x20] sm:$0xff] (!%p1350_p8)  ;;  %v1708_v47 = vpack.c.bf16 (!%p1350_p8), %v2100_v46, %v2095_v45 }
  0x2e   : > { %v547_v55 = vadd.f32 %v1469_v44, %v546_v51  ;;  %v1696_v35 = vpack.c.bf16 (!%p1350_p8), %v2045_v32, %v2040_v31  ;;  %v1702_v41 = vpack.c.bf16 (!%p1350_p8), %v2074_v40, %v2069_v39  ;;  %v2121_v51 = vld [vmem:[%s2528_s2 + $0x60] sm:$0xff] (!%p1350_p8) }
  0x2f   : > { %v492_v49 = vadd.f32 %v1438_v38, %v491_v43  ;;  %v1699_v38 = vpack.c.bf16 (!%p1350_p8), %v2058_v36, %v2050_v33  ;;  %v2087_v43 = vld [vmem:[%s2528_s2 + $0x38] sm:$0xff] (!%p1350_p8) }
  0x30   : > { %v548_v61 = vadd.f32 %v1470_v50, %v547_v55  ;;  %1697 = vmatpush3.bf16.msra.mxu1 (!%p1350_p8), %v1696_v35  ;;  %v2139_v55 = vld [vmem:[%s2528_s2 + $0x78] sm:$0xff] (!%p1350_p8)  ;;  %v786_v35 = vld [vmem:[%s2533_s7 + $0x48] sm:$0xff] (!%p1350_p8) }
  0x31   : > { %v493_v53 = vadd.f32 %v1441_v42, %v492_v49  ;;  %1698 = vmatprep.subr.bf16.mxu1 (!%p1350_p8), %v1900_v34  ;;  %v2082_v42 = vld [vmem:[%s2528_s2 + $0x30] sm:$0xff] (!%p1350_p8)  ;;  %v2113_v49 = vld [vmem:[%s2528_s2 + $0x58] sm:$0xff] (!%p1350_p8) }
  0x32   : > { %v549_v1 = vadd.f32 %v1473_v54, %v548_v61  ;;  %v1705_v44 = vpack.c.bf16 (!%p1350_p8), %v2087_v43, %v2082_v42  ;;  %v2134_v54 = vld [vmem:[%s2528_s2 + $0x70] sm:$0xff] (!%p1350_p8) }
  0x33   : > { %v494_v59 = vadd.f32 %v1442_v48, %v493_v53  ;;  %v2108_v48 = vld [vmem:[%s2528_s2 + $0x50] sm:$0xff] (!%p1350_p8)  ;;  %v1717_v56 = vpack.c.bf16 (!%p1350_p8), %v2139_v55, %v2134_v54 }
  0x34   : > { %v550_v6 = vadd.f32 %v1474_v60, %v549_v1  ;;  %1700 = vmatpush3.bf16.msra.mxu1 (!%p1350_p8), %v1699_v38  ;;  %v1711_v50 = vpack.c.bf16 (!%p1350_p8), %v2113_v49, %v2108_v48  ;;  %v2175_v1 = vld [vmem:[%s2530_s4 + $0x20] sm:$0xff] (!%p1350_p8)  ;;  %v788_v38 = vld [vmem:[%s2533_s7 + $0x58] sm:$0xff] (!%p1350_p8) }
  0x35   : > { %v495_v63 = vadd.f32 %v1445_v52, %v494_v59  ;;  %1701 = vmatprep.subr.bf16.mxu1 (!%p1350_p8), %v1900_v34  ;;  %v2126_v52 = vld [vmem:[%s2528_s2 + $0x68] sm:$0xff] (!%p1350_p8) }
  0x36   : > { %v551_v9 = vadd.f32 %v1477_v0, %v550_v6  ;;  %v1714_v53 = vpack.c.bf16 (!%p1350_p8), %v2126_v52, %v2121_v51  ;;  %v2152_v59 = vld [vmem:[%s2530_s4 + $0x8] sm:$0xff] (!%p1350_p8) }
  0x37   : > { %v496_v4 = vadd.f32 %v1446_v58, %v495_v63  ;;  %v2147_v58 = vld [vmem:[%s2530_s4] sm:$0xff] (!%p1350_p8)  ;;  %v2165_v63 = vld [vmem:[%s2530_s4 + $0x18] sm:$0xff] (!%p1350_p8) }
  0x38   : > { %v552_v12 = vadd.f32 %v1478_v5, %v551_v9  ;;  %1703 = vmatpush3.bf16.msra.mxu1 (!%p1350_p8), %v1702_v41  ;;  %v1720_v61 = vpack.c.bf16 (!%p1350_p8), %v2152_v59, %v2147_v58  ;;  %v2193_v5 = vld [vmem:[%s2530_s4 + $0x38] sm:$0xff] (!%p1350_p8) }
  0x39   : > { %v497_v7 = vadd.f32 %v1449_v62, %v496_v4  ;;  %1704 = vmatprep.subr.bf16.mxu1 (!%p1350_p8), %v1900_v34  ;;  %v2160_v62 = vld [vmem:[%s2530_s4 + $0x10] sm:$0xff] (!%p1350_p8) }
  0x3a   : > { %v553_v14 = vadd.f32 %v1481_v8, %v552_v12  ;;  %v1723_v0 = vpack.c.bf16 (!%p1350_p8), %v2165_v63, %v2160_v62  ;;  %v2188_v4 = vld [vmem:[%s2530_s4 + $0x30] sm:$0xff] (!%p1350_p8)  ;;  %v2206_v8 = vld [vmem:[%s2530_s4 + $0x48] sm:$0xff] (!%p1350_p8) }
  0x3b   : > { %v498_v10 = vadd.f32 %v1450_v3, %v497_v7  ;;  %v1726_v3 = vpack.c.bf16 (!%p1350_p8), %v2180_v2, %v2175_v1  ;;  %v1729_v6 = vpack.c.bf16 (!%p1350_p8), %v2193_v5, %v2188_v4  ;;  %v2201_v7 = vld [vmem:[%s2530_s4 + $0x40] sm:$0xff] (!%p1350_p8) }
  0x3c   : > { %v554_v16 = vadd.f32 %v1482_v11, %v553_v14  ;;  %1706 = vmatpush3.bf16.msra.mxu1 (!%p1350_p8), %v1705_v44  ;;  %v1732_v9 = vpack.c.bf16 (!%p1350_p8), %v2206_v8, %v2201_v7  ;;  %v2219_v11 = vld [vmem:[%s2530_s4 + $0x58] sm:$0xff] (!%p1350_p8)  ;;  %v2232_v14 = vld [vmem:[%s2530_s4 + $0x68] sm:$0xff] (!%p1350_p8)  ;;  %v1751_v44 = vpack.c.bf16 (!%p1350_p8), %v788_v38, %v786_v35 }
  0x3d   : > { %v499_v13 = vrot.slane %v498_v10, 4  ;;  %1707 = vmatprep.subr.bf16.mxu1 (!%p1350_p8), %v1900_v34  ;;  %v808_v35 = vld [vmem:[%s2533_s7 + $0xf8] sm:$0xff] (!%p1350_p8) }
  0x3e   : > { %v555_v18 = vrot.slane %v554_v16, 4 }
  0x3f   : > { %v500_v15 = vadd.f32 %v499_v13, %v498_v10  ;;  %v2214_v10 = vld [vmem:[%s2530_s4 + $0x50] sm:$0xff] (!%p1350_p8)  ;;  %v2227_v13 = vld [vmem:[%s2530_s4 + $0x60] sm:$0xff] (!%p1350_p8) }
  0x40   : > { %v556_v20 = vadd.f32 %v555_v18, %v554_v16  ;;  %1709 = vmatpush3.bf16.msra.mxu1 (!%p1350_p8), %v1708_v47  ;;  %v1735_v12 = vpack.c.bf16 (!%p1350_p8), %v2219_v11, %v2214_v10  ;;  %v2240_v16 = vld [vmem:[%s2530_s4 + $0x70] sm:$0xff] (!%p1350_p8)  ;;  %v785_v47 = vld [vmem:[%s2533_s7 + $0x40] sm:$0xff] (!%p1350_p8) }
  0x41   : > { %v501_v17 = vrot.slane %v500_v15, 2  ;;  %1710 = vmatprep.subr.bf16.mxu1 (!%p1350_p8), %v1900_v34 }
  0x42   : > { %v557_v22 = vrot.slane %v556_v20, 2 }
  0x43   : > { %v502_v19 = vadd.f32 %v501_v17, %v500_v15  ;;  %v1738_v15 = vpack.c.bf16 (!%p1350_p8), %v2232_v14, %v2227_v13  ;;  %v2245_v17 = vld [vmem:[%s2530_s4 + $0x78] sm:$0xff] (!%p1350_p8) }
  0x44   : > { %v558_v25 = vadd.f32 %v557_v22, %v556_v20  ;;  %1712 = vmatpush3.bf16.msra.mxu1 (!%p1350_p8), %v1711_v50  ;;  %v1741_v18 = vpack.c.bf16 (!%p1350_p8), %v2245_v17, %v2240_v16  ;;  %v780_v22 = vld [vmem:[%s2533_s7 + $0x18] sm:$0xff] (!%p1350_p8)  ;;  %v787_v50 = vld [vmem:[%s2533_s7 + $0x50] sm:$0xff] (!%p1350_p8) }
  0x45   : > { %v503_v21 = vrot.slane %v502_v19, 1  ;;  %1713 = vmatprep.subr.bf16.mxu1 (!%p1350_p8), %v1900_v34 }
  0x46   : > { %v559_v27 = vrot.slane %v558_v25, 1  ;;  %566 = sbr.rel (%p1350_p8) target bundleno = 631 (0x277), region = 60 }
  0x47   : > { %v504_v24 = vadd.f32 %v503_v21, %v502_v19  ;;  %v778_v21 = vld [vmem:[%s2533_s7 + $0x8] sm:$0xff] (!%p1350_p8) }
  0x48   : > { %v560_v29 = vadd.f32 %v559_v27, %v558_v25  ;;  %1715 = vmatpush3.bf16.msra.mxu1 (!%p1350_p8), %v1714_v53  ;;  %v779_v25 = vld [vmem:[%s2533_s7 + $0x10] sm:$0xff] (!%p1350_p8)  ;;  %v782_v27 = vld [vmem:[%s2533_s7 + $0x28] sm:$0xff] (!%p1350_p8) }
  0x49   : > { %v505_v26 = vadd.f32 %v504_v24, %v451_v23  ;;  %1716 = vmatprep.subr.bf16.mxu1 (!%p1350_p8), %v1900_v34  ;;  %v1743_v23 = vpack.c.bf16 (!%p1350_p8), %v780_v22, %v778_v21  ;;  %v777_v24 = vld [vmem:[%s2533_s7] sm:$0xff] (!%p1350_p8)  ;;  %v790_v53 = vld [vmem:[%s2533_s7 + $0x68] sm:$0xff] (!%p1350_p8) }
  0x4a   : > { %v561_v30 = vadd.f32 %v560_v29, %v507_v28  ;;  %v784_v28 = vld [vmem:[%s2533_s7 + $0x38] sm:$0xff] (!%p1350_p8)  ;;  %v781_v29 = vld [vmem:[%s2533_s7 + $0x20] sm:$0xff] (!%p1350_p8) }
  0x4b   : > { %506 = vst [vmem:[#allocation2] sm:$0x1] %v505_v26  ;;  %v1745_v26 = vpack.c.bf16 (!%p1350_p8), %v779_v25, %v777_v24  ;;  %1744 = vmatprep.subr.bf16.mxu0 (!%p1350_p8), %v1743_v23  ;;  %v797_v23 = vld [vmem:[%s2533_s7 + $0xa0] sm:$0xff] (!%p1350_p8)  ;;  %v799_v24 = vld [vmem:[%s2533_s7 + $0xb0] sm:$0xff] (!%p1350_p8)  ;;  %v802_v25 = vld [vmem:[%s2533_s7 + $0xc8] sm:$0xff] (!%p1350_p8) }
  0x4c   : > { %562 = vst [vmem:[#allocation3] sm:$0x1] %v561_v30  ;;  %1718 = vmatpush3.bf16.msra.mxu1 (!%p1350_p8), %v1717_v56  ;;  %v1747_v30 = vpack.c.bf16 (!%p1350_p8), %v784_v28, %v782_v27  ;;  %v792_v56 = vld [vmem:[%s2533_s7 + $0x78] sm:$0xff] (!%p1350_p8)  ;;  %v1765_v27 = vpack.c.bf16 (!%p1350_p8), %v799_v24, %v797_v23  ;;  %v751_v23 = vld [vmem:[%s2532_s6 + $0x30] sm:$0xff] (!%p1350_p8)  ;;  %v754_v24 = vld [vmem:[%s2532_s6 + $0x48] sm:$0xff] (!%p1350_p8) }
  0x4d   : > { %1719 = vmatprep.subr.bf16.mxu1 %v1900_v34  ;;  %1746 = vmatpush1.bf16.msra.mxu0 %v1745_v26  ;;  %v804_v26 = vld [vmem:[%s2533_s7 + $0xd8] sm:$0xff] }
  0x4e   : > { %1748 = vmatprep.subr.bf16.mxu0 %v1747_v30  ;;  %v1767_v28 = vpack.c.bf16 %v804_v26, %v802_v25  ;;  %v803_v30 = vld [vmem:[%s2533_s7 + $0xd0] sm:$0xff]  ;;  %v756_v25 = vld [vmem:[%s2532_s6 + $0x58] sm:$0xff] }
  0x52   : > { %v567_v57 = vld [vmem:[#allocation2] sm:$0x1] }
  0x53   : > { %v568_v60 = vmul.f32 0.00390625, %v567_v57  ;;  %v569_v19 = vld [vmem:[#allocation3] sm:$0x1]  ;;  %v1753_v57 = vpack.c.bf16 %v787_v50, %v785_v47  ;;  %v807_v47 = vld [vmem:[%s2533_s7 + $0xf0] sm:$0xff] }
  0x54   : > { %v570_v20 = vmul.f32 0.00390625, %v569_v19  ;;  %v798_v19 = vld [vmem:[%s2533_s7 + $0xa8] sm:$0xff] }
  0x55   : > { %1658 = vmatmul.mubr.f32.vlgmr.msra.gmra.mrb[0].mxu1 %v568_v60  ;;  %v1755_v60 = vpack.c.bf16 %v792_v56, %v790_v53  ;;  %v746_v53 = vld [vmem:[%s2532_s6 + $0x8] sm:$0xff]  ;;  %v748_v56 = vld [vmem:[%s2532_s6 + $0x18] sm:$0xff] }
  0x56   : > { %1721 = vmatpush3.bf16.msra.mxu1 %v1720_v61  ;;  %1692 = vmatprep.mubr.msk.f32.mxu1 %vm1901_vm0, %v1902_v37  ;;  %v789_v61 = vld [vmem:[%s2533_s7 + $0x60] sm:$0xff] }
  0x57   : > { %1722 = vmatprep.subr.bf16.mxu1 %v1900_v34 }
  0x5a   : > { %1724 = vmatpush3.bf16.msra.mxu1 %v1723_v0  ;;  %v791_v0 = vld [vmem:[%s2533_s7 + $0x70] sm:$0xff] }
  0x5b   : > { %1725 = vmatprep.subr.bf16.mxu1 %v1900_v34 }
  0x5e   : > { %1727 = vmatpush3.bf16.msra.mxu1 %v1726_v3  ;;  %v794_v3 = vld [vmem:[%s2533_s7 + $0x88] sm:$0xff] }
  0x5f   : > { %1728 = vmatprep.subr.bf16.mxu1 %v1900_v34 }
  0x62   : > { %1730 = vmatpush3.bf16.msra.mxu1 %v1729_v6  ;;  %v796_v6 = vld [vmem:[%s2533_s7 + $0x98] sm:$0xff] }
  0x63   : > { %1731 = vmatprep.subr.bf16.mxu1 %v1900_v34 }
  0x66   : > { %1733 = vmatpush3.bf16.msra.mxu1 %v1732_v9  ;;  %v1757_v9 = vpack.c.bf16 %v791_v0, %v789_v61  ;;  %v745_v0 = vld [vmem:[%s2532_s6] sm:$0xff] }
  0x67   : > { %1734 = vmatprep.subr.bf16.mxu1 %v1900_v34 }
  0x6a   : > { %1736 = vmatpush3.bf16.msra.mxu1 %v1735_v12  ;;  %v1759_v12 = vpack.c.bf16 %v796_v6, %v794_v3  ;;  %v747_v3 = vld [vmem:[%s2532_s6 + $0x10] sm:$0xff]  ;;  %v674_v6 = vld [vmem:[%s2531_s5] sm:$0x1] }
  0x6b   : > { %1737 = vmatprep.subr.bf16.mxu1 %v1900_v34 }
  0x6e   : > { %1739 = vmatpush3.bf16.msra.mxu1 %v1738_v15  ;;  %v793_v15 = vld [vmem:[%s2533_s7 + $0x80] sm:$0xff] }
  0x6f   : > { %1740 = vmatprep.subr.bf16.mxu1 %v1900_v34  ;;  %v783_v34 = vld [vmem:[%s2533_s7 + $0x30] sm:$0xff] }
  0x70   : > { %v1749_v41 = vpack.c.bf16 %v783_v34, %v781_v29  ;;  %v801_v29 = vld [vmem:[%s2533_s7 + $0xc0] sm:$0xff]  ;;  %v806_v34 = vld [vmem:[%s2533_s7 + $0xe8] sm:$0xff] }
  0x71   : > { %v1769_v38 = vpack.c.bf16 %v803_v30, %v801_v29  ;;  %v755_v29 = vld [vmem:[%s2532_s6 + $0x50] sm:$0xff]  ;;  %v758_v30 = vld [vmem:[%s2532_s6 + $0x68] sm:$0xff] }
  0x72   : > { %1742 = vmatpush3.bf16.msra.mxu1 %v1741_v18  ;;  %1750 = vmatpush1.bf16.msra.mxu0 %v1749_v41  ;;  %v795_v18 = vld [vmem:[%s2533_s7 + $0x90] sm:$0xff]  ;;  %v1771_v41 = vpack.c.bf16 %v808_v35, %v806_v34  ;;  %v760_v34 = vld [vmem:[%s2532_s6 + $0x78] sm:$0xff] }
  0x73   : > { %1752 = vmatprep.subr.bf16.mxu0 %v1751_v44  ;;  %v1761_v21 = vpack.c.bf16 %v795_v18, %v793_v15  ;;  %v805_v44 = vld [vmem:[%s2533_s7 + $0xe0] sm:$0xff]  ;;  %v1777_v18 = vpack.c.bf16 %v747_v3, %v745_v0  ;;  %v1787_v35 = vpack.c.bf16 %v760_v34, %v758_v30  ;;  %v768_v0 = vld [vmem:[%s2532_s6 + $0xb8] sm:$0xff] }
  0x74   : > { %v1773_v50 = vpack.c.bf16 %v807_v47, %v805_v44  ;;  %v762_v44 = vld [vmem:[%s2532_s6 + $0x88] sm:$0xff]  ;;  %v764_v47 = vld [vmem:[%s2532_s6 + $0x98] sm:$0xff]  ;;  %v587_v30 = vld [vmem:[%s2529_s3] sm:$0x1] }
  0x75   : > { %1693 = vmatmul.mubr.f32.vlgmr.msra.gmra.mrb[2].mxu1 %v570_v20  ;;  %v800_v20 = vld [vmem:[%s2533_s7 + $0xb8] sm:$0xff] }
  0x76   : > { %1754 = vmatpush1.bf16.msra.mxu0 %v1753_v57  ;;  %v1763_v22 = vpack.c.bf16 %v800_v20, %v798_v19  ;;  %v1775_v57 = vpack.c.bf16 %v748_v56, %v746_v53  ;;  %v1791_v53 = vpack.c.bf16 %v764_v47, %v762_v44  ;;  %v761_v56 = vld [vmem:[%s2532_s6 + $0x80] sm:$0xff] }
  0x77   : > { %1756 = vmatprep.subr.bf16.mxu0 %v1755_v60 }
  0x7a   : > { %1758 = vmatpush1.bf16.msra.mxu0 %v1757_v9  ;;  %v750_v9 = vld [vmem:[%s2532_s6 + $0x28] sm:$0xff] }
  0x7b   : > { %1760 = vmatprep.subr.bf16.mxu0 %v1759_v12  ;;  %v752_v12 = vld [vmem:[%s2532_s6 + $0x38] sm:$0xff] }
  0x7e   : > { %1762 = vmatpush1.bf16.msra.mxu0 %v1761_v21  ;;  %v1779_v21 = vpack.c.bf16 %v752_v12, %v750_v9  ;;  %v765_v9 = vld [vmem:[%s2532_s6 + $0xa0] sm:$0xff]  ;;  %v767_v12 = vld [vmem:[%s2532_s6 + $0xb0] sm:$0xff] }
  0x7f   : > { %1764 = vmatprep.subr.bf16.mxu0 %v1763_v22  ;;  %v749_v22 = vld [vmem:[%s2532_s6 + $0x20] sm:$0xff] }
  0x80   : > { %v1781_v26 = vpack.c.bf16 %v751_v23, %v749_v22  ;;  %v771_v22 = vld [vmem:[%s2532_s6 + $0xd0] sm:$0xff]  ;;  %v774_v23 = vld [vmem:[%s2532_s6 + $0xe8] sm:$0xff] }
  0x82   : > { %1766 = vmatpush1.bf16.msra.mxu0 %v1765_v27  ;;  %v1783_v27 = vpack.c.bf16 %v756_v25, %v754_v24  ;;  %v776_v24 = vld [vmem:[%s2532_s6 + $0xf8] sm:$0xff] }
  0x83   : > { %1768 = vmatprep.subr.bf16.mxu0 %v1767_v28  ;;  %v753_v28 = vld [vmem:[%s2532_s6 + $0x40] sm:$0xff] }
  0x86   : > { %1770 = vmatpush1.bf16.msra.mxu0 %v1769_v38  ;;  %v757_v38 = vld [vmem:[%s2532_s6 + $0x60] sm:$0xff] }
  0x87   : > { %1772 = vmatprep.subr.bf16.mxu0 %v1771_v41  ;;  %v759_v41 = vld [vmem:[%s2532_s6 + $0x70] sm:$0xff] }
  0x8a   : > { %1774 = vmatpush1.bf16.msra.mxu0 %v1773_v50  ;;  %v1789_v50 = vpack.c.bf16 %v759_v41, %v757_v38 }
  0x8b   : > { %1776 = vmatprep.subr.bf16.mxu0 %v1775_v57  ;;  %v763_v57 = vld [vmem:[%s2532_s6 + $0x90] sm:$0xff] }
  0x8c   : > { %v1793_v3 = vpack.c.bf16 %v763_v57, %v761_v56 }
 0x128   : > { %v2352_v60 = vpop.f32.mrb[0].mxu1 }
 0x129   : > { %v1659_v61 = vpop.f32.mrb[1].mxu1  ;;  %v655_v34 = vadd.f32 %v2352_v60, %v587_v30 }
 0x12a   : > { %v766_v61 = vld [vmem:[%s2532_s6 + $0xa8] sm:$0xff] }
 0x148   : > { %v741_v15 = vpop.f32.mrb[2].mxu1 }
 0x149   : > { %v742_v19 = vadd.f32 %v741_v15, %v674_v6  ;;  %v1694_v20 = vpop.f32.mrb[3].mxu1  ;;  %v1795_v6 = vpack.c.bf16 %v768_v0, %v766_v61  ;;  %v770_v15 = vld [vmem:[%s2532_s6 + $0xc8] sm:$0xff] }
 0x14b   : > { %874 = vmatmul.mubr.f32.vlgmr.msra.gmra.mrb[0].mxu0 %v742_v19  ;;  %v1797_v19 = vpack.c.bf16 %v767_v12, %v765_v9 }
 0x14c   : > { %1778 = vmatpush1.bf16.msra.mxu0 %v1777_v18  ;;  %944 = vmatprep.mubr.f32.mxu0 %v1902_v37  ;;  %v1785_v37 = vpack.c.bf16 %v755_v29, %v753_v28  ;;  %v772_v18 = vld [vmem:[%s2532_s6 + $0xd8] sm:$0xff]  ;;  %v775_v28 = vld [vmem:[%s2532_s6 + $0xf0] sm:$0xff] }
 0x14d   : > { %1780 = vmatprep.subr.bf16.mxu0 %v1779_v21  ;;  %v1799_v20 = vpack.c.bf16 %v772_v18, %v770_v15  ;;  %v769_v21 = vld [vmem:[%s2532_s6 + $0xc0] sm:$0xff] }
 0x14e   : > { %v1801_v25 = vpack.c.bf16 %v771_v22, %v769_v21  ;;  %v1180_v18 = vld [vmem:[%s2529_s3] sm:$0x1] }
 0x150   : > { %1782 = vmatpush1.bf16.msra.mxu0 %v1781_v26  ;;  %v1803_v26 = vpack.c.bf16 %v776_v24, %v774_v23 }
 0x151   : > { %1784 = vmatprep.subr.bf16.mxu0 %v1783_v27  ;;  %v773_v27 = vld [vmem:[%s2532_s6 + $0xe0] sm:$0xff] }
 0x152   : > { %v1805_v29 = vpack.c.bf16 %v775_v28, %v773_v27 }
 0x154   : > { %1786 = vmatpush1.bf16.msra.mxu0 %v1785_v37 }
 0x155   : > { %1788 = vmatprep.subr.bf16.mxu0 %v1787_v35 }
 0x158   : > { %1790 = vmatpush1.bf16.msra.mxu0 %v1789_v50 }
 0x159   : > { %1792 = vmatprep.subr.bf16.mxu0 %v1791_v53 }
 0x15c   : > { %1794 = vmatpush1.bf16.msra.mxu0 %v1793_v3  ;;  %v964_v3 = vlaneseq }
 0x15d   : > { %1796 = vmatprep.subr.bf16.mxu0 %v1795_v6 }
 0x15e   : > { %v965_v6 = vshrl.u32 %v964_v3, 7 }
 0x160   : > { %1798 = vmatpush1.bf16.msra.mxu0 %v1797_v19  ;;  %v966_v9 = vsub.s32 0, %v965_v6  ;;  %v1182_v19 = vld [vmem:[%s2531_s5] sm:$0x1] }
 0x161   : > { %1800 = vmatprep.subr.bf16.mxu0 %v1799_v20 }
 0x164   : > { %1802 = vmatpush1.bf16.msra.mxu0 %v1801_v25 }
 0x165   : > { %1804 = vmatprep.subr.bf16.mxu0 %v1803_v26 }
 0x168   : > { %1806 = vmatpush1.bf16.msra.mxu0 %v1805_v29 }
 0x16b   : > { %945 = vmatmul.mubr.f32.vlgmr.msra.gmra.mrb[0].mxu0 %v655_v34 }
 0x23e   : > { %v946_v37 = vpop.f32.mrb[0].mxu0 }
 0x23f   : > { %v951_v35 = vmax.f32 %v946_v37, 0.0  ;;  %v948_v38 = vpop.f32.mrb[1].mxu0 }
 0x240   : > { %v952_v41 = vmax.f32 %v948_v38, 0.0 }
 0x242   : > { %v953_v44 = vmax.f32 %v951_v35, %v952_v41 }
 0x244   : > { %v954_v47 = vsub.f32 %v951_v35, %v953_v44  ;;  %v957_v50 = vsub.f32 %v952_v41, %v953_v44 }
 0x246   : > { %v955_v53 = vmul.f32 1.442695, %v954_v47  ;;  %v958_v56 = vmul.f32 1.442695, %v957_v50 }
 0x248   : > { %1853 = vpow2.f32 %v955_v53 }
 0x249   : > { %1855 = vpow2.f32 %v958_v56 }
 0x252   : > { %v1854_v57 = vpop.eup %1853 }
 0x253   : > { %v1856_v61 = vpop.eup %1855 }
 0x254   : > { %v960_v0 = vadd.f32 %v1856_v61, %v1854_v57 }
 0x256   : > { %1857 = vrcp.f32 %v960_v0 }
 0x260   : > { %v1858_v60 = vpop.eup %1857 }
 0x261   : > { %v962_v12 = vmul.f32 %v1858_v60, %v1854_v57  ;;  %v963_v15 = vmul.f32 %v1858_v60, %v1856_v61 }
 0x263   : > { %v967_v20 = vrot.slane %v962_v12, %v966_v9  ;;  %v1083_v21 = vrot.slane %v963_v15, %v966_v9  ;;  %v1181_v22 = vmul.f32 %v1180_v18, %v962_v12  ;;  %v1183_v23 = vmul.f32 %v1182_v19, %v963_v15 }
 0x265   : > { %v968_v24 = vmul.f32 %v967_v20, %v2040_v31  ;;  %v969_v25 = vmul.f32 %v967_v20, %v2045_v32  ;;  %v970_v26 = vmul.f32 %v967_v20, %v2050_v33  ;;  %v971_v27 = vmul.f32 %v967_v20, %v2058_v36 }
 0x266   : > { %v972_v28 = vmul.f32 %v967_v20, %v2069_v39  ;;  %v973_v29 = vmul.f32 %v967_v20, %v2074_v40  ;;  %v974_v30 = vmul.f32 %v967_v20, %v2082_v42  ;;  %v975_v34 = vmul.f32 %v967_v20, %v2087_v43 }
 0x267   : > { %v976_v37 = vmul.f32 %v967_v20, %v2095_v45  ;;  %v977_v35 = vmul.f32 %v967_v20, %v2100_v46  ;;  %v978_v31 = vmul.f32 %v967_v20, %v2108_v48  ;;  %v979_v32 = vmul.f32 %v967_v20, %v2113_v49 }
 0x268   : > { %v980_v33 = vmul.f32 %v967_v20, %v2121_v51  ;;  %v981_v36 = vmul.f32 %v967_v20, %v2126_v52  ;;  %v982_v39 = vmul.f32 %v967_v20, %v2134_v54  ;;  %v983_v40 = vmul.f32 %v967_v20, %v2139_v55 }
 0x269   : > { %v1486_v42 = vpack.c.bf16 %v969_v25, %v968_v24  ;;  %v1491_v43 = vpack.c.bf16 %v971_v27, %v970_v26  ;;  %v1496_v45 = vpack.c.bf16 %v973_v29, %v972_v28  ;;  %v1501_v46 = vpack.c.bf16 %v975_v34, %v974_v30 }
 0x26a   : > { %v1506_v48 = vpack.c.bf16 %v977_v35, %v976_v37  ;;  %v1511_v38 = vpack.c.bf16 %v979_v32, %v978_v31  ;;  %v1516_v49 = vpack.c.bf16 %v981_v36, %v980_v33  ;;  %v1521_v41 = vpack.c.bf16 %v983_v40, %v982_v39 }
 0x26b   : > { %1487 = vst [vmem:[%s1998_s26] sm:$0xff] %v1486_v42   ;;  %1577 = vst [vmem:[%s1998_s26 + $0x8] sm:$0xff] %v1491_v43   ;;  %v1084_v51 = vmul.f32 %v1083_v21, %v2147_v58  ;;  %v1085_v52 = vmul.f32 %v1083_v21, %v2152_v59  ;;  %v1086_v54 = vmul.f32 %v1083_v21, %v2160_v62 }
 0x26c   : > { %1578 = vst [vmem:[%s1998_s26 + $0x10] sm:$0xff] %v1496_v45   ;;  %1579 = vst [vmem:[%s1998_s26 + $0x18] sm:$0xff] %v1501_v46   ;;  %v1087_v55 = vmul.f32 %v1083_v21, %v2165_v63  ;;  %v1088_v44 = vmul.f32 %v1083_v21, %v2175_v1  ;;  %v1089_v47 = vmul.f32 %v1083_v21, %v2180_v2 }
 0x26d   : > { %1580 = vst [vmem:[%s1998_s26 + $0x20] sm:$0xff] %v1506_v48   ;;  %1581 = vst [vmem:[%s1998_s26 + $0x28] sm:$0xff] %v1511_v38   ;;  %v1090_v50 = vmul.f32 %v1083_v21, %v2188_v4  ;;  %v1091_v53 = vmul.f32 %v1083_v21, %v2193_v5  ;;  %v1092_v58 = vmul.f32 %v1083_v21, %v2201_v7 }
 0x26e   : > { %1582 = vst [vmem:[%s1998_s26 + $0x30] sm:$0xff] %v1516_v49   ;;  %1583 = vst [vmem:[%s1998_s26 + $0x38] sm:$0xff] %v1521_v41   ;;  %v1093_v59 = vmul.f32 %v1083_v21, %v2206_v8  ;;  %v1094_v62 = vmul.f32 %v1083_v21, %v2214_v10  ;;  %v1095_v63 = vmul.f32 %v1083_v21, %v2219_v11 }
 0x26f   : > { %v1096_v1 = vmul.f32 %v1083_v21, %v2227_v13  ;;  %v1097_v2 = vmul.f32 %v1083_v21, %v2232_v14  ;;  %v1098_v4 = vmul.f32 %v1083_v21, %v2240_v16  ;;  %v1099_v5 = vmul.f32 %v1083_v21, %v2245_v17 }
 0x270   : > { %v1526_v7 = vpack.c.bf16 %v1085_v52, %v1084_v51  ;;  %v1531_v8 = vpack.c.bf16 %v1087_v55, %v1086_v54  ;;  %v1536_v10 = vpack.c.bf16 %v1089_v47, %v1088_v44  ;;  %v1541_v56 = vpack.c.bf16 %v1091_v53, %v1090_v50 }
 0x271   : > { %v1546_v57 = vpack.c.bf16 %v1093_v59, %v1092_v58  ;;  %v1551_v11 = vpack.c.bf16 %v1095_v63, %v1094_v62  ;;  %v1556_v61 = vpack.c.bf16 %v1097_v2, %v1096_v1  ;;  %v1561_v0 = vpack.c.bf16 %v1099_v5, %v1098_v4 }
 0x272   : > { %1527 = vst [vmem:[%s2003_s30] sm:$0xff] %v1526_v7   ;;  %1584 = vst [vmem:[%s2003_s30 + $0x8] sm:$0xff] %v1531_v8   ;;  %v1184_v13 = vadd.f32 %v1183_v23, %v1181_v22 }
 0x273   : > { %1585 = vst [vmem:[%s2003_s30 + $0x10] sm:$0xff] %v1536_v10   ;;  %1586 = vst [vmem:[%s2003_s30 + $0x18] sm:$0xff] %v1541_v56  }
 0x274   : > { %1587 = vst [vmem:[%s2003_s30 + $0x20] sm:$0xff] %v1546_v57   ;;  %1588 = vst [vmem:[%s2003_s30 + $0x28] sm:$0xff] %v1551_v11  }
 0x275   : > { %1589 = vst [vmem:[%s2003_s30 + $0x30] sm:$0xff] %v1556_v61   ;;  %1590 = vst [vmem:[%s2003_s30 + $0x38] sm:$0xff] %v1561_v0  }
 0x276   : > { %1185 = vst [vmem:[%s444_s25] sm:$0x1] %v1184_v13 }
 0x277 PF: > { %s21_s17 = sadd.s32 1, %s1897_s17   ;;  %s2541_s14 = sld [smem:[#allocation4_spill]] }
 0x278   : > { %p18_p9 = scmp.ge.s32.totalorder %s21_s17, 6   ;;  %s2542_s27 = sld [smem:[#allocation5_spill]] }
 0x279   : > { %s2543_s16 = sld [smem:[#allocation6_spill]]  ;;  %s2544_s13 = smov %s1889_s15 }
 0x27a   :  { %20 = sbr.rel (!%p18_p9) target bundleno = 3 (0x3), region = 117 }
 0x27e   : > { %s2545_s15 = smov %s2542_s27 }

// kernel: aw3_pallas.3
= control target key start
LH: loop header
LB: loop body
LE: loop exit
PB: predicated region body
PF: predicated region fallthrough
CT: control target
= control target key end

     0   :  { %10 = vsyncpa [#allocation3], 0  ;;  %s1627_s0 = inlined_call_operand.vmem [shape: f32[2,1,128], index: 0, kind: input, shape index: {}]   ;;  %s1628_s1 = inlined_call_operand.vmem [shape: bf16[2,256,128], index: 1, kind: input, shape index: {}]   ;;  %s1629_s2 = inlined_call_operand.vmem [shape: bf16[2,256,128], index: 2, kind: input, shape index: {}]   ;;  %s1630_s3 = inlined_call_operand.vmem [shape: bf16[2,128,128], index: 3, kind: input, shape index: {}]   ;;  %s1631_s4 = inlined_call_operand.vmem [shape: bf16[2,128,128], index: 4, kind: input, shape index: {}]   ;;  %s1632_s5 = inlined_call_operand.hbm [shape: f32[2,256,128], index: 5, kind: output, shape index: {}]  }
   0x1   :  { %12 = vsyncpa [#allocation3 + $0x1], 0  ;;  %s1386_s18 = smov 0   ;;  %s1388_s19 = smov 0  }
   0x2   :  { %s1390_s20 = smov 0   ;;  %s1392_s21 = smov 0  }
   0x3   :  { %s1394_s22 = smov 0   ;;  %s1396_s23 = smov 0  }
   0x4   :  { %s1398_s24 = smov 0   ;;  %s1400_s25 = smov 0  }
   0x5 LB: > { %s983_s26 = sadd.s32 4294967295, %s1351_s25   ;;  %s984_s27 = sadd.s32 4294967294, %s1351_s25   ;;  %s1351_s25 = sphi %s1400_s25, %s18_s25   ;;  %s1347_s24 = sphi %s1398_s24, %s1641_s24   ;;  %s1343_s23 = sphi %s1396_s23, %s1640_s23   ;;  %s1339_s22 = sphi %s1394_s22, %s1639_s22   ;;  %s1335_s21 = sphi %s1392_s21, %s1638_s21   ;;  %s1331_s20 = sphi %s1390_s20, %s1637_s20   ;;  %s1327_s19 = sphi %s1388_s19, %s1636_s19   ;;  %s1323_s18 = sphi %s1386_s18, %s1635_s18  }
   0x6   : > { %s27_s28 = sadd.s32 1, %s1343_s23  ;;  %s30_s29 = sadd.s32 1, %s1347_s24 }
   0x7   : > { %p28_p0 = scmp.ge.s32.totalorder %s27_s28, 2  ;;  %p183_p1 = scmp.ne.s32.totalorder %s1331_s20, %s1327_s19 }
   0x8   : > { %p184_p2 = scmp.eq.s32.totalorder %s983_s26, 3  ;;  %p189_p5 = scmp.ne.s32.totalorder %s1327_s19, %s1323_s18 }
   0x9   : > { %s1643_s28 = smov (%p28_p0, %s27_s28), 0  ;;  %s1645_s29 = smov (!%p28_p0, %s30_s29), %s1347_s24 }
   0xa   : > { %s169_s30 = ssub.s32 %s1343_s23, %s1643_s28  ;;  %p1437_p3 = por %p184_p2, %p183_p1 }
   0xb   : > { %p32_p4 = scmp.ge.s32.totalorder %s1645_s29, 2  ;;  %p190_p6 = scmp.eq.s32.totalorder %s984_s27, 3 }
   0xc   : > { %p987_p7 = scmp.ge.s32.totalorder %s1351_s25, 1  ;;  %p256_p9 = scmp.lt.s32.totalorder %s1351_s25, 5 }
   0xd   : > { %s1647_s29 = smov (%p32_p4, %s1645_s29), 0  ;;  %p1446_p8 = por %p190_p6, %p189_p5 }
   0xe   : > { %s168_s8 = ssub.s32 %s1347_s24, %s1647_s29  ;;  %s173_s9 = sadd.s32 1, %s1331_s20 }
   0xf   : > { %s170_s10 = sor.u32 %s169_s30, %s168_s8  ;;  %p257_p10 = pnand %p987_p7, %p256_p9 }
  0x10   : > { %p171_p11 = scmp.eq.s32.totalorder %s170_s10, 0  ;;  %p310_p12 = scmp.lt.s32.totalorder (!%p257_p10), %s1339_s22, 1 }
  0x11   : > { %260 = sbr.rel (%p257_p10) target bundleno = 320 (0x140), region = 40  ;;  %s1459_s12 = sshll.u32 (!%p257_p10), %s1335_s21, 4 }
  0x12   : > { %s1455_s11 = scalar_select %p171_p11, %s1331_s20, %s173_s9  }
  0x13   : > { %p316_p13 = scmp.lt.s32.totalorder (!%p257_p10), %s1459_s12, 31 }
  0x18   : > { %s1462_s13 = scalar_select %p310_p12, %s1339_s22, 1 }
  0x19   : > { %s317_s30 = scalar_select %p316_p13, %s1459_s12, 31 }
  0x1a   : > { %s1038_s14 = sshll.u32 %s1462_s13, 6  ;;  %s990_s8 = sshll.u32 %s1462_s13, 5 }
  0x1b   : > { %s1469_s17 = scalar_lea.vmem %s1631_s4, %s1038_s14  ;;  %s1474_s21 = scalar_lea.vmem %s1630_s3, %s1038_s14 }
  0x1c   : > { %v1225_v0 = vld [vmem:[%s1469_s17] sm:$0xff]   ;;  %v1227_v2 = vld [vmem:[%s1469_s17 + $0x8] sm:$0xff]   ;;  %v1229_v4 = vld [vmem:[%s1469_s17 + $0x10] sm:$0xff]   ;;  %s319_s9 = sadd.s32 %s990_s8, %s317_s30  ;;  %s1034_s14 = sshll.u32 %s1339_s22, 5 }
  0x1d   : > { %v1226_v1 = vld [vmem:[%s1474_s21] sm:$0xff]   ;;  %1072 = vmatprep.subr.bf16.mxu1 %v1225_v0  ;;  %v1228_v3 = vld [vmem:[%s1474_s21 + $0x8] sm:$0xff]   ;;  %v1230_v5 = vld [vmem:[%s1474_s21 + $0x10] sm:$0xff]   ;;  %s991_s10 = sshll.u32 %s319_s9, 2  ;;  %s312_s9 = scalar_lea.vmem %s1627_s0, %s1462_s13 }
  0x1e   : > { %1104 = vmatprep.subr.bf16.mxu0 %v1226_v1  ;;  %1073 = vmatpush3.bf16.msra.mxu1 %v1225_v0  ;;  %v1231_v6 = vld [vmem:[%s1469_s17 + $0x18] sm:$0xff]   ;;  %v1233_v8 = vld [vmem:[%s1469_s17 + $0x20] sm:$0xff]   ;;  %s1491_s16 = scalar_lea.vmem %s1629_s2, %s991_s10  ;;  %v1235_v10 = vld [vmem:[%s1469_s17 + $0x28] sm:$0xff]   ;;  %s1497_s30 = scalar_lea.vmem %s1628_s1, %s991_s10 }
  0x1f   : > { %1105 = vmatpush3.bf16.msra.mxu0 %v1226_v1  ;;  %1074 = vmatprep.subr.bf16.mxu1 %v1227_v2  ;;  %v1232_v7 = vld [vmem:[%s1474_s21 + $0x18] sm:$0xff]   ;;  %v1234_v9 = vld [vmem:[%s1474_s21 + $0x20] sm:$0xff]   ;;  %v1236_v11 = vld [vmem:[%s1474_s21 + $0x28] sm:$0xff]   ;;  %s847_s15 = sadd.s32 %s1034_s14, %s1459_s12  ;;  %s1353_s8 = smov [#allocation2]  }
  0x20   : > { %1106 = vmatprep.subr.bf16.mxu0 %v1228_v3  ;;  %v1241_v12 = vld [vmem:[%s1491_s16] sm:$0xff]   ;;  %v1237_v14 = vld [vmem:[%s1469_s17 + $0x30] sm:$0xff]   ;;  %v1239_v16 = vld [vmem:[%s1469_s17 + $0x38] sm:$0xff]   ;;  %s307_s17 = sand.u32 1, %s1327_s19   ;;  %s1035_s22 = sshll.u32 %s847_s15, 7 }
  0x21   : > { %v1242_v13 = vld [vmem:[%s1497_s30] sm:$0xff]   ;;  %1088 = vmatprep.mubr.bf16.mxu1 %v1241_v12  ;;  %v1238_v15 = vld [vmem:[%s1474_s21 + $0x30] sm:$0xff]   ;;  %v1240_v17 = vld [vmem:[%s1474_s21 + $0x38] sm:$0xff]   ;;  %s988_s10 = sshll.u32 %s307_s17, 7  ;;  %s1562_s27 = scalar_lea.hbm %s1632_s5, %s1035_s22 }
  0x22   : > { %1075 = vmatpush3.bf16.msra.mxu1 %v1227_v2  ;;  %1120 = vmatprep.mubr.bf16.mxu0 %v1242_v13  ;;  %v1243_v18 = vld [vmem:[%s1491_s16 + $0x8] sm:$0xff]   ;;  %v1245_v20 = vld [vmem:[%s1491_s16 + $0x10] sm:$0xff]   ;;  %v1247_v22 = vld [vmem:[%s1491_s16 + $0x18] sm:$0xff]   ;;  %s1531_s13 = scalar_lea.vmem [#allocation2], %s988_s10 }
  0x23   : > { %1107 = vmatpush3.bf16.msra.mxu0 %v1228_v3  ;;  %1076 = vmatprep.subr.bf16.mxu1 %v1229_v4  ;;  %v1244_v19 = vld [vmem:[%s1497_s30 + $0x8] sm:$0xff]   ;;  %v1246_v21 = vld [vmem:[%s1497_s30 + $0x10] sm:$0xff]   ;;  %v1248_v23 = vld [vmem:[%s1497_s30 + $0x18] sm:$0xff]   ;;  %s850_s12 = sshll.u32 %s1531_s13, 4  ;;  %s1567_s12 = int_to_ptr.vmem [resolvable:$true] %s850_s12 }
  0x24   : > { %1108 = vmatprep.subr.bf16.mxu0 %v1230_v5  ;;  %v1249_v24 = vld [vmem:[%s1491_s16 + $0x20] sm:$0xff]   ;;  %v1251_v26 = vld [vmem:[%s1491_s16 + $0x28] sm:$0xff]   ;;  %v1253_v28 = vld [vmem:[%s1491_s16 + $0x30] sm:$0xff]   ;;  %s1257_s21 = scalar_lea.vmem %s1567_s12, 2048 }
  0x25   : > { %v1250_v25 = vld [vmem:[%s1497_s30 + $0x20] sm:$0xff]   ;;  %v1252_v27 = vld [vmem:[%s1497_s30 + $0x28] sm:$0xff]   ;;  %v1254_v29 = vld [vmem:[%s1497_s30 + $0x30] sm:$0xff]   ;;  %p1258_p0 = scmp.ne.s32.totalorder %s1567_s12, %s1257_s21 }
  0x26   : > { %1077 = vmatpush3.bf16.msra.mxu1 %v1229_v4  ;;  %v1255_v30 = vld [vmem:[%s1491_s16 + $0x38] sm:$0xff]   ;;  %v1527_v34 = vld [vmem:[%s312_s9] ss:$0 sm:$0xff]  ;;  %s1261_s9 = sshll.u32 %s1353_s8, 4  ;;  %s1262_s9 = int_to_ptr.vmem [resolvable:$false] %s1261_s9 }
  0x27   : > { %1109 = vmatpush3.bf16.msra.mxu0 %v1230_v5  ;;  %1078 = vmatprep.subr.bf16.mxu1 %v1231_v6  ;;  %v1256_v31 = vld [vmem:[%s1497_s30 + $0x38] sm:$0xff]   ;;  %s1575_s30 = scalar_lea.sflag [#allocation3], %s307_s17  ;;  %p1259_p1 = pnand %p1258_p0, %p1437_p3 }
  0x28   : > { %1110 = vmatprep.subr.bf16.mxu0 %v1232_v7  ;;  %s1263_s10 = scalar_lea.vmem %s1262_s9, 4096  ;;  %p1264_p4 = scmp.lt.s32.totalorder %s1567_s12, %s1262_s9 }
  0x29   : > { %p1260_p2 = pneg %p1259_p1  ;;  %p1265_p5 = scmp.lt.s32.totalorder %s1263_s10, %s1257_s21 }
  0x2a   : > { %1079 = vmatpush3.bf16.msra.mxu1 %v1231_v6 }
  0x2b   : > { %1111 = vmatpush3.bf16.msra.mxu0 %v1232_v7  ;;  %1080 = vmatprep.subr.bf16.mxu1 %v1233_v8  ;;  %p1266_p6 = por %p1265_p5, %p1264_p4 }
  0x2c   : > { %1112 = vmatprep.subr.bf16.mxu0 %v1234_v9 }
  0x2d   : > { %p1267_p7 = pnand %p1266_p6, %p1260_p2 }
  0x2e   : > { %1081 = vmatpush3.bf16.msra.mxu1 %v1233_v8 }
  0x2f   : > { %1113 = vmatpush3.bf16.msra.mxu0 %v1234_v9  ;;  %1082 = vmatprep.subr.bf16.mxu1 %v1235_v10 }
  0x30   : > { %1114 = vmatprep.subr.bf16.mxu0 %v1236_v11 }
  0x32   : > { %1083 = vmatpush3.bf16.msra.mxu1 %v1235_v10 }
  0x33   : > { %1115 = vmatpush3.bf16.msra.mxu0 %v1236_v11  ;;  %1084 = vmatprep.subr.bf16.mxu1 %v1237_v14 }
  0x34   : > { %1116 = vmatprep.subr.bf16.mxu0 %v1238_v15 }
  0x36   : > { %1085 = vmatpush3.bf16.msra.mxu1 %v1237_v14 }
  0x37   : > { %1117 = vmatpush3.bf16.msra.mxu0 %v1238_v15  ;;  %1086 = vmatprep.subr.bf16.mxu1 %v1239_v16 }
  0x38   : > { %1118 = vmatprep.subr.bf16.mxu0 %v1240_v17 }
  0x3a   : > { %1087 = vmatpush3.bf16.msra.mxu1 %v1239_v16 }
  0x3b   : > { %1119 = vmatpush3.bf16.msra.mxu0 %v1240_v17 }
  0x3d   : > { %1089 = vmatmul.mubr.bf16.vlgmr.msra.gmra.mrb[0].mxu1 %v1243_v18 }
  0x3e   : > { %1121 = vmatmul.mubr.bf16.vlgmr.msra.gmra.mrb[0].mxu0 %v1244_v19  ;;  %1092 = vmatprep.mubr.bf16.mxu1 %v1245_v20 }
  0x3f   : > { %1124 = vmatprep.mubr.bf16.mxu0 %v1246_v21 }
  0x45   : > { %1093 = vmatmul.mubr.bf16.gmra.mrb[4].mxu1 %v1247_v22 }
  0x46   : > { %1125 = vmatmul.mubr.bf16.gmra.mrb[4].mxu0 %v1248_v23  ;;  %1096 = vmatprep.mubr.bf16.mxu1 %v1249_v24 }
  0x47   : > { %1128 = vmatprep.mubr.bf16.mxu0 %v1250_v25 }
  0x4d   : > { %1097 = vmatmul.mubr.bf16.gmra.mrb[8].mxu1 %v1251_v26 }
  0x4e   : > { %1129 = vmatmul.mubr.bf16.gmra.mrb[8].mxu0 %v1252_v27  ;;  %1100 = vmatprep.mubr.bf16.mxu1 %v1253_v28 }
  0x4f   : > { %1132 = vmatprep.mubr.bf16.mxu0 %v1254_v29 }
  0x55   : > { %1101 = vmatmul.mubr.bf16.gmra.mrb[12].mxu1 %v1255_v30 }
  0x56   : > { %1133 = vmatmul.mubr.bf16.gmra.mrb[12].mxu0 %v1256_v31 }
 0x110   : > { %v1090_v32 = vpop.f32.mrb[0].mxu1 }
 0x111   : > { %v1122_v33 = vpop.f32.mrb[0].mxu0  ;;  %v539_v35 = vpop.f32.mrb[1].mxu1 }
 0x112   : > { %v741_v36 = vadd.f32 %v1122_v33, %v1090_v32  ;;  %v732_v37 = vpop.f32.mrb[1].mxu0  ;;  %v1091_v38 = vpop.f32.mrb[2].mxu1 }
 0x113   : > { %v733_v39 = vadd.f32 %v732_v37, %v539_v35  ;;  %v1123_v40 = vpop.f32.mrb[2].mxu0  ;;  %v542_v41 = vpop.f32.mrb[3].mxu1 }
 0x114   : > { %v804_v42 = vadd.f32 %v1527_v34, %v741_v36  ;;  %v744_v43 = vadd.f32 %v1123_v40, %v1091_v38  ;;  %v735_v44 = vpop.f32.mrb[3].mxu0 }
 0x115   : > { %v802_v45 = vadd.f32 %v1527_v34, %v733_v39  ;;  %v736_v46 = vadd.f32 %v735_v44, %v542_v41 }
 0x116   : > { %820 = vst [vmem:[%s1531_s13 + $0x10] sm:$0xff] %v804_v42  ;;  %v805_v47 = vadd.f32 %v1527_v34, %v744_v43 }
 0x117   : > { %818 = vst [vmem:[%s1531_s13] sm:$0xff] %v802_v45  ;;  %v803_v48 = vadd.f32 %v1527_v34, %v736_v46 }
 0x118   : > { %821 = vst [vmem:[%s1531_s13 + $0x18] sm:$0xff] %v805_v47  ;;  %v1094_v49 = vpop.f32.mrb[4].mxu1 }
 0x119   : > { %819 = vst [vmem:[%s1531_s13 + $0x8] sm:$0xff] %v803_v48  ;;  %v1126_v50 = vpop.f32.mrb[4].mxu0  ;;  %v555_v51 = vpop.f32.mrb[5].mxu1 }
 0x11a   : > { %v757_v52 = vadd.f32 %v1126_v50, %v1094_v49  ;;  %v748_v53 = vpop.f32.mrb[5].mxu0  ;;  %v1095_v54 = vpop.f32.mrb[6].mxu1 }
 0x11b   : > { %v749_v55 = vadd.f32 %v748_v53, %v555_v51  ;;  %v1127_v56 = vpop.f32.mrb[6].mxu0  ;;  %v558_v57 = vpop.f32.mrb[7].mxu1 }
 0x11c   : > { %v808_v58 = vadd.f32 %v1527_v34, %v757_v52  ;;  %v760_v59 = vadd.f32 %v1127_v56, %v1095_v54  ;;  %v751_v60 = vpop.f32.mrb[7].mxu0 }
 0x11d   : > { %v806_v61 = vadd.f32 %v1527_v34, %v749_v55  ;;  %v752_v62 = vadd.f32 %v751_v60, %v558_v57 }
 0x11e   : > { %824 = vst [vmem:[%s1531_s13 + $0x30] sm:$0xff] %v808_v58  ;;  %v809_v63 = vadd.f32 %v1527_v34, %v760_v59 }
 0x11f   : > { %822 = vst [vmem:[%s1531_s13 + $0x20] sm:$0xff] %v806_v61  ;;  %v807_v0 = vadd.f32 %v1527_v34, %v752_v62 }
 0x120   : > { %825 = vst [vmem:[%s1531_s13 + $0x38] sm:$0xff] %v809_v63  ;;  %v1098_v1 = vpop.f32.mrb[8].mxu1 }
 0x121   : > { %823 = vst [vmem:[%s1531_s13 + $0x28] sm:$0xff] %v807_v0  ;;  %v1130_v2 = vpop.f32.mrb[8].mxu0  ;;  %v571_v3 = vpop.f32.mrb[9].mxu1 }
 0x122   : > { %v773_v4 = vadd.f32 %v1130_v2, %v1098_v1  ;;  %v764_v5 = vpop.f32.mrb[9].mxu0  ;;  %v1099_v6 = vpop.f32.mrb[10].mxu1 }
 0x123   : > { %v765_v7 = vadd.f32 %v764_v5, %v571_v3  ;;  %v1131_v8 = vpop.f32.mrb[10].mxu0  ;;  %v574_v9 = vpop.f32.mrb[11].mxu1 }
 0x124   : > { %v812_v10 = vadd.f32 %v1527_v34, %v773_v4  ;;  %v776_v11 = vadd.f32 %v1131_v8, %v1099_v6  ;;  %v767_v12 = vpop.f32.mrb[11].mxu0 }
 0x125   : > { %v810_v13 = vadd.f32 %v1527_v34, %v765_v7  ;;  %v768_v14 = vadd.f32 %v767_v12, %v574_v9 }
 0x126   : > { %828 = vst [vmem:[%s1531_s13 + $0x50] sm:$0xff] %v812_v10  ;;  %v813_v15 = vadd.f32 %v1527_v34, %v776_v11 }
 0x127   : > { %826 = vst [vmem:[%s1531_s13 + $0x40] sm:$0xff] %v810_v13  ;;  %v811_v16 = vadd.f32 %v1527_v34, %v768_v14 }
 0x128   : > { %829 = vst [vmem:[%s1531_s13 + $0x58] sm:$0xff] %v813_v15  ;;  %v1102_v17 = vpop.f32.mrb[12].mxu1 }
 0x129   : > { %827 = vst [vmem:[%s1531_s13 + $0x48] sm:$0xff] %v811_v16  ;;  %v1134_v18 = vpop.f32.mrb[12].mxu0  ;;  %v587_v19 = vpop.f32.mrb[13].mxu1 }
 0x12a   : > { %v789_v20 = vadd.f32 %v1134_v18, %v1102_v17  ;;  %v780_v21 = vpop.f32.mrb[13].mxu0  ;;  %v1103_v22 = vpop.f32.mrb[14].mxu1 }
 0x12b   : > { %v781_v23 = vadd.f32 %v780_v21, %v587_v19  ;;  %v1135_v24 = vpop.f32.mrb[14].mxu0  ;;  %v590_v25 = vpop.f32.mrb[15].mxu1 }
 0x12c   : > { %v816_v26 = vadd.f32 %v1527_v34, %v789_v20  ;;  %v792_v27 = vadd.f32 %v1135_v24, %v1103_v22  ;;  %v783_v28 = vpop.f32.mrb[15].mxu0 }
 0x12d   : > { %v814_v29 = vadd.f32 %v1527_v34, %v781_v23  ;;  %v784_v30 = vadd.f32 %v783_v28, %v590_v25 }
 0x12e   : > { %832 = vst [vmem:[%s1531_s13 + $0x70] sm:$0xff] %v816_v26  ;;  %v817_v31 = vadd.f32 %v1527_v34, %v792_v27 }
 0x12f   : > { %830 = vst [vmem:[%s1531_s13 + $0x60] sm:$0xff] %v814_v29  ;;  %v815_v32 = vadd.f32 %v1527_v34, %v784_v30 }
 0x130   : > { %833 = vst [vmem:[%s1531_s13 + $0x78] sm:$0xff] %v817_v31 }
 0x131   : > { %831 = vst [vmem:[%s1531_s13 + $0x68] sm:$0xff] %v815_v32 }
 0x132   : > { %1270 = shalt.err (!%p1267_p7)
}
 0x133   : > { %s1271_s17 = scalar_lea.hbm %s1562_s27, 2048  ;;  %s1275_s15 = scalar_lea.hbm %s1632_s5, 8192 }
 0x134   : > { %p1272_p9 = scmp.ne.s32.totalorder %s1562_s27, %s1271_s17  ;;  %p1276_p12 = scmp.lt.u32.totalorder %s1562_s27, %s1632_s5 }
 0x135   : > { %p1277_p13 = scmp.lt.u32.totalorder %s1275_s15, %s1271_s17  ;;  %p1279_p1 = scmp.lt.u32.totalorder %s1271_s17, %s1562_s27 }
 0x136   : > { %p1273_p10 = pnand %p1272_p9, %p1437_p3 }
 0x137   : > { %p1278_p0 = por %p1277_p13, %p1276_p12 }
 0x138   : > { %p1274_p11 = pneg %p1273_p10 }
 0x139   : > { %p1280_p2 = por %p1279_p1, %p1278_p0 }
 0x13b   : > { %p1281_p4 = pnand %p1280_p2, %p1274_p11 }
 0x13d   : > { %1284 = shalt.err (!%p1281_p4)
}
 0x13e   : > { %s1354_s26 = smov 128   ;;  %s1355_s21 = smov 8  }
 0x13f   : > { %1152 = dma.vmem_to_hbm [thread:$0]  (%p1437_p3), %s1567_s12, 2048, %s1562_s27, %s1575_s30, %s1354_s26, %s1354_s26, %s1355_s21  }
 0x140 PF: > { %p1158_p5 = scmp.ge.s32.totalorder %s1351_s25, 2  ;;  %s865_s8 = sand.u32 1, %s1323_s18  }
 0x141   : > { %s866_s9 = scalar_lea.sflag [#allocation3], %s865_s8 }
 0x142   : > { %p1155_p6 = pnand %p1158_p5, %p1446_p8 }
 0x144   : > { %1318 = dma.done.wait (!%p1155_p6), %s866_s9, 2048  }
 0x145   : > { %1320 = vsyncadd (!%p1155_p6), %s866_s9, 4294965248  ;;  %s18_s25 = sadd.s32 1, %s1351_s25   ;;  %s1635_s18 = smov %s1327_s19 }
 0x146   : > { %p15_p7 = scmp.ge.s32.totalorder %s18_s25, 6   ;;  %s1636_s19 = smov %s1331_s20 }
 0x147   : > { %s1637_s20 = smov %s1455_s11  ;;  %s1638_s21 = smov %s1343_s23 }
 0x148   : > { %s1639_s22 = smov %s1347_s24  ;;  %s1640_s23 = smov %s1643_s28 }
 0x149   : > { %s1641_s24 = smov %s1647_s29  ;;  %17 = sbr.rel (!%p15_p7) target bundleno = 5 (0x5), region = 87 }
 0x150   :  { %871 = vsyncpa [#allocation3], 1 }
 0x151   :  { %873 = vsyncpa [#allocation3 + $0x1], 1 }

</bundles_post_ra>
